<compile_context>
chip_gen: v6e
topology: v6e:2x2x1
jax: 0.10.0
libtpu: 0.0.40
codegen_flags: <defaults>
</compile_context>

<pallas_src>
import math

import jax
import jax.numpy as jnp
from jax.experimental import pallas as pl
from jax.experimental.pallas import tpu as pltpu

_EPS = 1e-5  # PyTorch BatchNorm1d default eps


def _mm(a, w):
    # MXU matmul: cast the activation to the (possibly bf16) weight dtype,
    # accumulate in f32.
    return jnp.dot(a.astype(w.dtype), w, preferred_element_type=jnp.float32)


def _leaky(v):
    return jnp.where(v >= 0.0, v, 0.01 * v)  # PyTorch LeakyReLU default slope


def mlp_conditional_kernel(x_ref, cond_ref,
                           w1_ref, b1_ref, g1_ref, be1_ref, rm1_ref, rv1_ref,
                           wgb_ref, bgb_ref,
                           wskip_ref, bskip_ref, gs_ref, bes_ref, rms_ref, rvs_ref,
                           crm_h_ref, crv_h_ref,
                           wf_ref, bf_ref, crm_f_ref, crv_f_ref,
                           out_ref):
    n_skip = wskip_ref.shape[0]
    n_hid = wskip_ref.shape[2]
    n_out_p = bf_ref.shape[1]

    x = x_ref[...]        # (tb, n_in)   f32
    cond = cond_ref[...]  # (tb, n_cond) f32

    # ---- all conditional-BN gamma/beta projections fused into a single matmul ----
    gb = _mm(cond, wgb_ref[...]) + bgb_ref[...]          # (tb, G) f32

    # ---- Linear_block 1: fc -> LeakyReLU -> (dropout=id) -> BN(affine) ----
    h = _mm(x, w1_ref[...]) + b1_ref[...]
    h = _leaky(h)
    h = (h - rm1_ref[...]) * jax.lax.rsqrt(rv1_ref[...] + _EPS) * g1_ref[...] + be1_ref[...]

    # ---- ConditionalBatchNorm 1 ----
    crm_h = crm_h_ref[...]                               # (1+n_skip, n_hid)
    crv_h = crv_h_ref[...]
    h = (h - crm_h[0:1, :]) * jax.lax.rsqrt(crv_h[0:1, :] + _EPS)
    off = 0
    h = gb[:, off:off + n_hid] * h + gb[:, off + n_hid:off + 2 * n_hid]
    off += 2 * n_hid

    # ---- skip layers: Linear_skip_block -> ConditionalBatchNorm ----
    bskip = bskip_ref[...]
    gs, bes = gs_ref[...], bes_ref[...]
    rms, rvs = rms_ref[...], rvs_ref[...]
    for i in range(n_skip):
        t = _leaky(_mm(h, wskip_ref[i]) + bskip[i:i + 1, :])
        h = h + t
        h = (h - rms[i:i + 1, :]) * jax.lax.rsqrt(rvs[i:i + 1, :] + _EPS) \
            * gs[i:i + 1, :] + bes[i:i + 1, :]
        h = (h - crm_h[i + 1:i + 2, :]) * jax.lax.rsqrt(crv_h[i + 1:i + 2, :] + _EPS)
        h = gb[:, off:off + n_hid] * h + gb[:, off + n_hid:off + 2 * n_hid]
        off += 2 * n_hid

    # ---- final linear + ConditionalBatchNorm (lane-dense, padded to n_out_p) ----
    y = _mm(h, wf_ref[...]) + bf_ref[...]
    y = (y - crm_f_ref[...]) * jax.lax.rsqrt(crv_f_ref[...] + _EPS)
    out_ref[...] = gb[:, off:off + n_out_p] * y + gb[:, off + n_out_p:off + 2 * n_out_p]


def mlp_conditional(x, cond, params, n_skip, *, block_rows=16, use_bf16=True):
    B, n_in = x.shape
    _, n_cond = cond.shape
    n_hid = params["lin1"]["w"].shape[1]
    n_out = params["lin_f"]["w"].shape[1]
    n_out_p = ((n_out + 127) // 128) * 128               # lane-dense output store
    mm_dtype = jnp.bfloat16 if use_bf16 else jnp.float32

    assert n_skip >= 1, "packing assumes at least one skip layer"
    assert block_rows % 8 == 0

    tb = block_rows
    B_pad = ((B + tb - 1) // tb) * tb

    def row2d(v):
        return jnp.asarray(v, jnp.float32)[None, :]

    def pad_cols(w, width, value=0.0):
        return jnp.pad(w, ((0, 0), (0, width - w.shape[1])), constant_values=value)

    def pad_vec(v, width, value=0.0):
        return jnp.pad(v, (0, width - v.shape[0]), constant_values=value)

    # ---- fused gamma/beta projection: [cbn1 g | cbn1 b | skip_i g | skip_i b | final g | final b]
    cbns = [params["cbn1"]] + list(params["cbn_h"])
    wgb_cols, bgb_cols = [], []
    for p in cbns:
        wgb_cols += [p["wg"], p["wb"]]
        bgb_cols += [p["bg"], p["bb"]]
    pf = params["cbn_f"]
    wgb_cols += [pad_cols(pf["wg"], n_out_p), pad_cols(pf["wb"], n_out_p)]
    bgb_cols += [pad_vec(pf["bg"], n_out_p), pad_vec(pf["bb"], n_out_p)]
    wgb = jnp.concatenate(wgb_cols, axis=1).astype(mm_dtype)       # (n_cond, G)
    bgb = jnp.concatenate(bgb_cols)[None, :].astype(jnp.float32)   # (1, G)
    G = wgb.shape[1]

    # ---- stacked skip-layer parameters ----
    wskip = jnp.stack([s["w"] for s in params["skip"]]).astype(mm_dtype)
    bskip = jnp.stack([s["b"] for s in params["skip"]]).astype(jnp.float32)
    gs = jnp.stack([s["bn_g"] for s in params["skip"]]).astype(jnp.float32)
    bes = jnp.stack([s["bn_b"] for s in params["skip"]]).astype(jnp.float32)
    rms = jnp.stack([s["bn_rm"] for s in params["skip"]]).astype(jnp.float32)
    rvs = jnp.stack([s["bn_rv"] for s in params["skip"]]).astype(jnp.float32)
    crm_h = jnp.stack([p["rm"] for p in cbns]).astype(jnp.float32)   # (1+n_skip, n_hid)
    crv_h = jnp.stack([p["rv"] for p in cbns]).astype(jnp.float32)

    # ---- first / final layers ----
    w1 = params["lin1"]["w"].astype(mm_dtype)
    b1 = row2d(params["lin1"]["b"])
    g1, be1 = row2d(params["bn1"]["g"]), row2d(params["bn1"]["b"])
    rm1, rv1 = row2d(params["bn1"]["rm"]), row2d(params["bn1"]["rv"])
    wf = pad_cols(params["lin_f"]["w"], n_out_p).astype(mm_dtype)
    bf = row2d(pad_vec(params["lin_f"]["b"], n_out_p))
    crm_f = row2d(pad_vec(pf["rm"], n_out_p))
    crv_f = row2d(pad_vec(pf["rv"], n_out_p, value=1.0))

    x_p = jnp.pad(x.astype(jnp.float32), ((0, B_pad - B), (0, 0)))
    cond_p = jnp.pad(cond.astype(jnp.float32), ((0, B_pad - B), (0, 0)))

    def const_spec(shape):
        if len(shape) == 2:
            return pl.BlockSpec(shape, lambda b: (0, 0))
        return pl.BlockSpec(shape, lambda b: (0, 0, 0))

    in_specs = [
        pl.BlockSpec((tb, n_in), lambda b: (b, 0)),            # x
        pl.BlockSpec((tb, n_cond), lambda b: (b, 0)),          # cond
        const_spec((n_in, n_hid)), const_spec((1, n_hid)),     # w1, b1
        const_spec((1, n_hid)), const_spec((1, n_hid)),        # bn1 gamma / beta
        const_spec((1, n_hid)), const_spec((1, n_hid)),        # bn1 run mean / var
        const_spec((n_cond, G)), const_spec((1, G)),           # fused gamma/beta proj
        const_spec((n_skip, n_hid, n_hid)),                    # skip fc weights
        const_spec((n_skip, n_hid)),                           # skip fc biases
        const_spec((n_skip, n_hid)), const_spec((n_skip, n_hid)),  # skip bn gamma / beta
        const_spec((n_skip, n_hid)), const_spec((n_skip, n_hid)),  # skip bn mean / var
        const_spec((1 + n_skip, n_hid)), const_spec((1 + n_skip, n_hid)),  # cbn hidden stats
        const_spec((n_hid, n_out_p)), const_spec((1, n_out_p)),    # final linear
        const_spec((1, n_out_p)), const_spec((1, n_out_p)),        # cbn final stats
    ]

    out = pl.pallas_call(
        mlp_conditional_kernel,
        out_shape=jax.ShapeDtypeStruct((B_pad, n_out_p), jnp.float32),
        grid=(B_pad // tb,),
        in_specs=in_specs,
        out_specs=pl.BlockSpec((tb, n_out_p), lambda b: (b, 0)),
        compiler_params=pltpu.CompilerParams(dimension_semantics=("parallel",)),
    )(x_p, cond_p,
      w1, b1, g1, be1, rm1, rv1,
      wgb, bgb,
      wskip, bskip, gs, bes, rms, rvs,
      crm_h, crv_h,
      wf, bf, crm_f, crv_f)

    return out[:B, :n_out]


def reference_mlp_conditional(x, cond, params, n_skip, matmul_dtype=jnp.float32):
    """Pure-JAX reference matching PyTorch MLPConditional (eval mode)."""
    def mm(a, w):
        return jnp.dot(a.astype(matmul_dtype), w.astype(matmul_dtype),
                       preferred_element_type=jnp.float32)

    def leaky(v):
        return jnp.where(v >= 0.0, v, 0.01 * v)

    def bn(v, rm, rv, g=None, b=None):
        v = (v - rm) * jax.lax.rsqrt(rv + _EPS)
        if g is not None:
            v = v * g + b
        return v

    def cbn(v, p):
        v = bn(v, p["rm"], p["rv"])
        gamma = mm(cond, p["wg"]) + p["bg"]
        beta = mm(cond, p["wb"]) + p["bb"]
        return gamma * v + beta

    h = leaky(mm(x, params["lin1"]["w"]) + params["lin1"]["b"])
    b1 = params["bn1"]
    h = bn(h, b1["rm"], b1["rv"], b1["g"], b1["b"])
    h = cbn(h, params["cbn1"])
    for i in range(n_skip):
        s = params["skip"][i]
        h = h + leaky(mm(h, s["w"]) + s["b"])
        h = bn(h, s["bn_rm"], s["bn_rv"], s["bn_g"], s["bn_b"])
        h = cbn(h, params["cbn_h"][i])
    y = mm(h, params["lin_f"]["w"]) + params["lin_f"]["b"]
    y = cbn(y, params["cbn_f"])
    return y


def init_params(key, n_in, n_hid, n_out, n_cond, n_skip):
    keys = iter(jax.random.split(key, 128))

    def nrm(shape, scale):
        return jax.random.normal(next(keys), shape, jnp.float32) * scale

    def unif(shape, lo, hi):
        return jax.random.uniform(next(keys), shape, jnp.float32, lo, hi)

    def cbn(n_feat):
        return {
            "rm": nrm((n_feat,), 0.1),
            "rv": unif((n_feat,), 0.8, 1.2),
            "wg": nrm((n_cond, n_feat), 1.0 / math.sqrt(n_cond)),
            "bg": 1.0 + nrm((n_feat,), 0.1),
            "wb": nrm((n_cond, n_feat), 1.0 / math.sqrt(n_cond)),
            "bb": nrm((n_feat,), 0.1),
        }

    params = {
        "lin1": {"w": nrm((n_in, n_hid), 1.0 / math.sqrt(n_in)), "b": nrm((n_hid,), 0.02)},
        "bn1": {"g": 1.0 + nrm((n_hid,), 0.1), "b": nrm((n_hid,), 0.1),
                "rm": nrm((n_hid,), 0.1), "rv": unif((n_hid,), 0.8, 1.2)},
        "cbn1": cbn(n_hid),
        "skip": [],
        "cbn_h": [],
        "lin_f": {"w": nrm((n_hid, n_out), 1.0 / math.sqrt(n_hid)), "b": nrm((n_out,), 0.02)},
        "cbn_f": cbn(n_out),
    }
    for _ in range(n_skip):
        params["skip"].append({
            "w": nrm((n_hid, n_hid), 1.0 / math.sqrt(n_hid)),
            "b": nrm((n_hid,), 0.02),
            "bn_g": 1.0 + nrm((n_hid,), 0.1), "bn_b": nrm((n_hid,), 0.1),
            "bn_rm": nrm((n_hid,), 0.1), "bn_rv": unif((n_hid,), 0.8, 1.2),
        })
        params["cbn_h"].append(cbn(n_hid))
    return params


if __name__ == "__main__":
    # batch, n_input_units, n_hidden_units, n_output_units, n_condition_features, n_skip_layers
    B, N_IN, N_HID, N_OUT, N_COND, N_SKIP = 64, 32, 128, 8, 16, 2

    key = jax.random.PRNGKey(0)
    kx, kc, kp = jax.random.split(key, 3)
    x = jax.random.normal(kx, (B, N_IN), jnp.float32)
    cond = jax.random.normal(kc, (B, N_COND), jnp.float32)
    params = init_params(kp, N_IN, N_HID, N_OUT, N_COND, N_SKIP)

    out = mlp_conditional(x, cond, params, N_SKIP, block_rows=16, use_bf16=True)
    out = jax.block_until_ready(out)
    assert out.shape == (B, N_OUT)

    # Reference uses the same bf16-matmul / f32-accumulate precision as the kernel.
    ref = reference_mlp_conditional(x, cond, params, N_SKIP, matmul_dtype=jnp.bfloat16)
    max_err = float(jnp.max(jnp.abs(out - ref)))
    assert jnp.allclose(out, ref, atol=2e-2, rtol=2e-2), max_err

    print("KERNEL_OK")
</pallas_src>

<mosaic_0001>
module attributes {stable_mosaic.version = 11 : i64} {
  func.func @mlp_conditional_kernel(%arg0: i32, %arg1: memref<16x32xf32, #tpu.memory_space<vmem>>, %arg2: memref<16x16xf32, #tpu.memory_space<vmem>>, %arg3: memref<32x128xbf16, #tpu.memory_space<vmem>>, %arg4: memref<1x128xf32, #tpu.memory_space<vmem>>, %arg5: memref<1x128xf32, #tpu.memory_space<vmem>>, %arg6: memref<1x128xf32, #tpu.memory_space<vmem>>, %arg7: memref<1x128xf32, #tpu.memory_space<vmem>>, %arg8: memref<1x128xf32, #tpu.memory_space<vmem>>, %arg9: memref<16x1024xbf16, #tpu.memory_space<vmem>>, %arg10: memref<1x1024xf32, #tpu.memory_space<vmem>>, %arg11: memref<2x128x128xbf16, #tpu.memory_space<vmem>>, %arg12: memref<2x128xf32, #tpu.memory_space<vmem>>, %arg13: memref<2x128xf32, #tpu.memory_space<vmem>>, %arg14: memref<2x128xf32, #tpu.memory_space<vmem>>, %arg15: memref<2x128xf32, #tpu.memory_space<vmem>>, %arg16: memref<2x128xf32, #tpu.memory_space<vmem>>, %arg17: memref<3x128xf32, #tpu.memory_space<vmem>>, %arg18: memref<3x128xf32, #tpu.memory_space<vmem>>, %arg19: memref<128x128xbf16, #tpu.memory_space<vmem>>, %arg20: memref<1x128xf32, #tpu.memory_space<vmem>>, %arg21: memref<1x128xf32, #tpu.memory_space<vmem>>, %arg22: memref<1x128xf32, #tpu.memory_space<vmem>>, %arg23: memref<16x128xf32, #tpu.memory_space<vmem>>) attributes {dimension_semantics = [#tpu.dimension_semantics<parallel>], iteration_bounds = array<i64: 4>, scalar_prefetch = 0 : i64, scratch_operands = 0 : i64, tpu.core_type = #tpu.core_type<tc>, window_params = [{transform_indices = @transform_0, window_bounds = array<i64: 16, 32>}, {transform_indices = @transform_1, window_bounds = array<i64: 16, 16>}, {pipeline_mode = #tpu.pipeline_mode<synchronous>, transform_indices = @transform_2, window_bounds = array<i64: 32, 128>}, {pipeline_mode = #tpu.pipeline_mode<synchronous>, transform_indices = @transform_3, window_bounds = array<i64: 1, 128>}, {pipeline_mode = #tpu.pipeline_mode<synchronous>, transform_indices = @transform_4, window_bounds = array<i64: 1, 128>}, {pipeline_mode = #tpu.pipeline_mode<synchronous>, transform_indices = @transform_5, window_bounds = array<i64: 1, 128>}, {pipeline_mode = #tpu.pipeline_mode<synchronous>, transform_indices = @transform_6, window_bounds = array<i64: 1, 128>}, {pipeline_mode = #tpu.pipeline_mode<synchronous>, transform_indices = @transform_7, window_bounds = array<i64: 1, 128>}, {pipeline_mode = #tpu.pipeline_mode<synchronous>, transform_indices = @transform_8, window_bounds = array<i64: 16, 1024>}, {pipeline_mode = #tpu.pipeline_mode<synchronous>, transform_indices = @transform_9, window_bounds = array<i64: 1, 1024>}, {pipeline_mode = #tpu.pipeline_mode<synchronous>, transform_indices = @transform_10, window_bounds = array<i64: 2, 128, 128>}, {pipeline_mode = #tpu.pipeline_mode<synchronous>, transform_indices = @transform_11, window_bounds = array<i64: 2, 128>}, {pipeline_mode = #tpu.pipeline_mode<synchronous>, transform_indices = @transform_12, window_bounds = array<i64: 2, 128>}, {pipeline_mode = #tpu.pipeline_mode<synchronous>, transform_indices = @transform_13, window_bounds = array<i64: 2, 128>}, {pipeline_mode = #tpu.pipeline_mode<synchronous>, transform_indices = @transform_14, window_bounds = array<i64: 2, 128>}, {pipeline_mode = #tpu.pipeline_mode<synchronous>, transform_indices = @transform_15, window_bounds = array<i64: 2, 128>}, {pipeline_mode = #tpu.pipeline_mode<synchronous>, transform_indices = @transform_16, window_bounds = array<i64: 3, 128>}, {pipeline_mode = #tpu.pipeline_mode<synchronous>, transform_indices = @transform_17, window_bounds = array<i64: 3, 128>}, {pipeline_mode = #tpu.pipeline_mode<synchronous>, transform_indices = @transform_18, window_bounds = array<i64: 128, 128>}, {pipeline_mode = #tpu.pipeline_mode<synchronous>, transform_indices = @transform_19, window_bounds = array<i64: 1, 128>}, {pipeline_mode = #tpu.pipeline_mode<synchronous>, transform_indices = @transform_20, window_bounds = array<i64: 1, 128>}, {pipeline_mode = #tpu.pipeline_mode<synchronous>, transform_indices = @transform_21, window_bounds = array<i64: 1, 128>}, {transform_indices = @transform_22, window_bounds = array<i64: 16, 128>}]} {
    %c0 = arith.constant 0 : index
    %c0_0 = arith.constant 0 : index
    %0 = vector.load %arg1[%c0, %c0_0] : memref<16x32xf32, #tpu.memory_space<vmem>>, vector<16x32xf32>
    %c0_1 = arith.constant 0 : index
    %c0_2 = arith.constant 0 : index
    %1 = vector.load %arg2[%c0_1, %c0_2] : memref<16x16xf32, #tpu.memory_space<vmem>>, vector<16x16xf32>
    %c0_3 = arith.constant 0 : index
    %c0_4 = arith.constant 0 : index
    %2 = vector.load %arg9[%c0_3, %c0_4] : memref<16x1024xbf16, #tpu.memory_space<vmem>>, vector<16x1024xbf16>
    %3 = arith.truncf %1 : vector<16x16xf32> to vector<16x16xbf16>
    %cst = arith.constant dense<0.000000e+00> : vector<16x1024xf32>
    %4 = tpu.matmul %3, %2, %cst {dimension_numbers = #tpu.dot_dimension_numbers<[1], [0], [0], [1], [0, 0, 1, 1], [], []>} : vector<16x16xbf16>, vector<16x1024xbf16>, vector<16x1024xf32> -> vector<16x1024xf32>
    %c0_5 = arith.constant 0 : index
    %c0_6 = arith.constant 0 : index
    %5 = vector.load %arg10[%c0_5, %c0_6] : memref<1x1024xf32, #tpu.memory_space<vmem>>, vector<1x1024xf32>
    %6 = vector.broadcast %5 : vector<1x1024xf32> to vector<16x1024xf32>
    %7 = arith.addf %4, %6 : vector<16x1024xf32>
    %c0_7 = arith.constant 0 : index
    %c0_8 = arith.constant 0 : index
    %8 = vector.load %arg3[%c0_7, %c0_8] : memref<32x128xbf16, #tpu.memory_space<vmem>>, vector<32x128xbf16>
    %9 = arith.truncf %0 : vector<16x32xf32> to vector<16x32xbf16>
    %cst_9 = arith.constant dense<0.000000e+00> : vector<16x128xf32>
    %10 = tpu.matmul %9, %8, %cst_9 {dimension_numbers = #tpu.dot_dimension_numbers<[1], [0], [0], [1], [0, 0, 1, 1], [], []>} : vector<16x32xbf16>, vector<32x128xbf16>, vector<16x128xf32> -> vector<16x128xf32>
    %c0_10 = arith.constant 0 : index
    %c0_11 = arith.constant 0 : index
    %11 = vector.load %arg4[%c0_10, %c0_11] : memref<1x128xf32, #tpu.memory_space<vmem>>, vector<1x128xf32>
    %12 = vector.broadcast %11 : vector<1x128xf32> to vector<16x128xf32>
    %13 = arith.addf %10, %12 : vector<16x128xf32>
    %cst_12 = arith.constant 0.000000e+00 : f32
    %14 = vector.broadcast %cst_12 : f32 to vector<16x128xf32>
    %15 = arith.cmpf oge, %13, %14 : vector<16x128xf32>
    %cst_13 = arith.constant 0.00999999977 : f32
    %16 = vector.broadcast %cst_13 : f32 to vector<16x128xf32>
    %17 = arith.mulf %16, %13 : vector<16x128xf32>
    %18 = arith.select %15, %13, %17 : vector<16x128xi1>, vector<16x128xf32>
    %c0_14 = arith.constant 0 : index
    %c0_15 = arith.constant 0 : index
    %19 = vector.load %arg7[%c0_14, %c0_15] : memref<1x128xf32, #tpu.memory_space<vmem>>, vector<1x128xf32>
    %20 = vector.broadcast %19 : vector<1x128xf32> to vector<16x128xf32>
    %21 = arith.subf %18, %20 : vector<16x128xf32>
    %c0_16 = arith.constant 0 : index
    %c0_17 = arith.constant 0 : index
    %22 = vector.load %arg8[%c0_16, %c0_17] : memref<1x128xf32, #tpu.memory_space<vmem>>, vector<1x128xf32>
    %cst_18 = arith.constant 9.99999974E-6 : f32
    %23 = vector.broadcast %cst_18 : f32 to vector<1x128xf32>
    %24 = arith.addf %22, %23 : vector<1x128xf32>
    %25 = math.rsqrt %24 : vector<1x128xf32>
    %26 = vector.broadcast %25 : vector<1x128xf32> to vector<16x128xf32>
    %27 = arith.mulf %21, %26 : vector<16x128xf32>
    %c0_19 = arith.constant 0 : index
    %c0_20 = arith.constant 0 : index
    %28 = vector.load %arg5[%c0_19, %c0_20] : memref<1x128xf32, #tpu.memory_space<vmem>>, vector<1x128xf32>
    %29 = vector.broadcast %28 : vector<1x128xf32> to vector<16x128xf32>
    %30 = arith.mulf %27, %29 : vector<16x128xf32>
    %c0_21 = arith.constant 0 : index
    %c0_22 = arith.constant 0 : index
    %31 = vector.load %arg6[%c0_21, %c0_22] : memref<1x128xf32, #tpu.memory_space<vmem>>, vector<1x128xf32>
    %32 = vector.broadcast %31 : vector<1x128xf32> to vector<16x128xf32>
    %33 = arith.addf %30, %32 : vector<16x128xf32>
    %c0_23 = arith.constant 0 : index
    %c0_24 = arith.constant 0 : index
    %34 = vector.load %arg17[%c0_23, %c0_24] : memref<3x128xf32, #tpu.memory_space<vmem>>, vector<3x128xf32>
    %c0_25 = arith.constant 0 : index
    %c0_26 = arith.constant 0 : index
    %35 = vector.load %arg18[%c0_25, %c0_26] : memref<3x128xf32, #tpu.memory_space<vmem>>, vector<3x128xf32>
    %36 = vector.extract_strided_slice %34 {offsets = [0, 0], sizes = [1, 128], strides = [1, 1]} : vector<3x128xf32> to vector<1x128xf32>
    %37 = vector.broadcast %36 : vector<1x128xf32> to vector<16x128xf32>
    %38 = arith.subf %33, %37 : vector<16x128xf32>
    %39 = vector.extract_strided_slice %35 {offsets = [0, 0], sizes = [1, 128], strides = [1, 1]} : vector<3x128xf32> to vector<1x128xf32>
    %cst_27 = arith.constant 9.99999974E-6 : f32
    %40 = vector.broadcast %cst_27 : f32 to vector<1x128xf32>
    %41 = arith.addf %39, %40 : vector<1x128xf32>
    %42 = math.rsqrt %41 : vector<1x128xf32>
    %43 = vector.broadcast %42 : vector<1x128xf32> to vector<16x128xf32>
    %44 = arith.mulf %38, %43 : vector<16x128xf32>
    %45 = vector.extract_strided_slice %7 {offsets = [0, 0], sizes = [16, 128], strides = [1, 1]} : vector<16x1024xf32> to vector<16x128xf32>
    %46 = arith.mulf %45, %44 : vector<16x128xf32>
    %47 = vector.extract_strided_slice %7 {offsets = [0, 128], sizes = [16, 128], strides = [1, 1]} : vector<16x1024xf32> to vector<16x128xf32>
    %48 = arith.addf %46, %47 : vector<16x128xf32>
    %c0_28 = arith.constant 0 : index
    %c0_29 = arith.constant 0 : index
    %49 = vector.load %arg12[%c0_28, %c0_29] : memref<2x128xf32, #tpu.memory_space<vmem>>, vector<2x128xf32>
    %c0_30 = arith.constant 0 : index
    %c0_31 = arith.constant 0 : index
    %50 = vector.load %arg13[%c0_30, %c0_31] : memref<2x128xf32, #tpu.memory_space<vmem>>, vector<2x128xf32>
    %c0_32 = arith.constant 0 : index
    %c0_33 = arith.constant 0 : index
    %51 = vector.load %arg14[%c0_32, %c0_33] : memref<2x128xf32, #tpu.memory_space<vmem>>, vector<2x128xf32>
    %c0_34 = arith.constant 0 : index
    %c0_35 = arith.constant 0 : index
    %52 = vector.load %arg15[%c0_34, %c0_35] : memref<2x128xf32, #tpu.memory_space<vmem>>, vector<2x128xf32>
    %c0_36 = arith.constant 0 : index
    %c0_37 = arith.constant 0 : index
    %53 = vector.load %arg16[%c0_36, %c0_37] : memref<2x128xf32, #tpu.memory_space<vmem>>, vector<2x128xf32>
    %c0_38 = arith.constant 0 : index
    %c0_39 = arith.constant 0 : index
    %c0_40 = arith.constant 0 : index
    %54 = vector.load %arg11[%c0_38, %c0_39, %c0_40] : memref<2x128x128xbf16, #tpu.memory_space<vmem>>, vector<1x128x128xbf16>
    %55 = vector.shape_cast %54 : vector<1x128x128xbf16> to vector<128x128xbf16>
    %56 = arith.truncf %48 : vector<16x128xf32> to vector<16x128xbf16>
    %cst_41 = arith.constant dense<0.000000e+00> : vector<16x128xf32>
    %57 = tpu.matmul %56, %55, %cst_41 {dimension_numbers = #tpu.dot_dimension_numbers<[1], [0], [0], [1], [0, 0, 1, 1], [], []>} : vector<16x128xbf16>, vector<128x128xbf16>, vector<16x128xf32> -> vector<16x128xf32>
    %58 = vector.extract_strided_slice %49 {offsets = [0, 0], sizes = [1, 128], strides = [1, 1]} : vector<2x128xf32> to vector<1x128xf32>
    %59 = vector.broadcast %58 : vector<1x128xf32> to vector<16x128xf32>
    %60 = arith.addf %57, %59 : vector<16x128xf32>
    %cst_42 = arith.constant 0.000000e+00 : f32
    %61 = vector.broadcast %cst_42 : f32 to vector<16x128xf32>
    %62 = arith.cmpf oge, %60, %61 : vector<16x128xf32>
    %cst_43 = arith.constant 0.00999999977 : f32
    %63 = vector.broadcast %cst_43 : f32 to vector<16x128xf32>
    %64 = arith.mulf %63, %60 : vector<16x128xf32>
    %65 = arith.select %62, %60, %64 : vector<16x128xi1>, vector<16x128xf32>
    %66 = arith.addf %48, %65 : vector<16x128xf32>
    %67 = vector.extract_strided_slice %52 {offsets = [0, 0], sizes = [1, 128], strides = [1, 1]} : vector<2x128xf32> to vector<1x128xf32>
    %68 = vector.broadcast %67 : vector<1x128xf32> to vector<16x128xf32>
    %69 = arith.subf %66, %68 : vector<16x128xf32>
    %70 = vector.extract_strided_slice %53 {offsets = [0, 0], sizes = [1, 128], strides = [1, 1]} : vector<2x128xf32> to vector<1x128xf32>
    %cst_44 = arith.constant 9.99999974E-6 : f32
    %71 = vector.broadcast %cst_44 : f32 to vector<1x128xf32>
    %72 = arith.addf %70, %71 : vector<1x128xf32>
    %73 = math.rsqrt %72 : vector<1x128xf32>
    %74 = vector.broadcast %73 : vector<1x128xf32> to vector<16x128xf32>
    %75 = arith.mulf %69, %74 : vector<16x128xf32>
    %76 = vector.extract_strided_slice %50 {offsets = [0, 0], sizes = [1, 128], strides = [1, 1]} : vector<2x128xf32> to vector<1x128xf32>
    %77 = vector.broadcast %76 : vector<1x128xf32> to vector<16x128xf32>
    %78 = arith.mulf %75, %77 : vector<16x128xf32>
    %79 = vector.extract_strided_slice %51 {offsets = [0, 0], sizes = [1, 128], strides = [1, 1]} : vector<2x128xf32> to vector<1x128xf32>
    %80 = vector.broadcast %79 : vector<1x128xf32> to vector<16x128xf32>
    %81 = arith.addf %78, %80 : vector<16x128xf32>
    %82 = vector.extract_strided_slice %34 {offsets = [1, 0], sizes = [1, 128], strides = [1, 1]} : vector<3x128xf32> to vector<1x128xf32>
    %83 = vector.broadcast %82 : vector<1x128xf32> to vector<16x128xf32>
    %84 = arith.subf %81, %83 : vector<16x128xf32>
    %85 = vector.extract_strided_slice %35 {offsets = [1, 0], sizes = [1, 128], strides = [1, 1]} : vector<3x128xf32> to vector<1x128xf32>
    %cst_45 = arith.constant 9.99999974E-6 : f32
    %86 = vector.broadcast %cst_45 : f32 to vector<1x128xf32>
    %87 = arith.addf %85, %86 : vector<1x128xf32>
    %88 = math.rsqrt %87 : vector<1x128xf32>
    %89 = vector.broadcast %88 : vector<1x128xf32> to vector<16x128xf32>
    %90 = arith.mulf %84, %89 : vector<16x128xf32>
    %91 = vector.extract_strided_slice %7 {offsets = [0, 256], sizes = [16, 128], strides = [1, 1]} : vector<16x1024xf32> to vector<16x128xf32>
    %92 = arith.mulf %91, %90 : vector<16x128xf32>
    %93 = vector.extract_strided_slice %7 {offsets = [0, 384], sizes = [16, 128], strides = [1, 1]} : vector<16x1024xf32> to vector<16x128xf32>
    %94 = arith.addf %92, %93 : vector<16x128xf32>
    %c1 = arith.constant 1 : index
    %c0_46 = arith.constant 0 : index
    %c0_47 = arith.constant 0 : index
    %95 = vector.load %arg11[%c1, %c0_46, %c0_47] : memref<2x128x128xbf16, #tpu.memory_space<vmem>>, vector<1x128x128xbf16>
    %96 = vector.shape_cast %95 : vector<1x128x128xbf16> to vector<128x128xbf16>
    %97 = arith.truncf %94 : vector<16x128xf32> to vector<16x128xbf16>
    %cst_48 = arith.constant dense<0.000000e+00> : vector<16x128xf32>
    %98 = tpu.matmul %97, %96, %cst_48 {dimension_numbers = #tpu.dot_dimension_numbers<[1], [0], [0], [1], [0, 0, 1, 1], [], []>} : vector<16x128xbf16>, vector<128x128xbf16>, vector<16x128xf32> -> vector<16x128xf32>
    %99 = vector.extract_strided_slice %49 {offsets = [1, 0], sizes = [1, 128], strides = [1, 1]} : vector<2x128xf32> to vector<1x128xf32>
    %100 = vector.broadcast %99 : vector<1x128xf32> to vector<16x128xf32>
    %101 = arith.addf %98, %100 : vector<16x128xf32>
    %cst_49 = arith.constant 0.000000e+00 : f32
    %102 = vector.broadcast %cst_49 : f32 to vector<16x128xf32>
    %103 = arith.cmpf oge, %101, %102 : vector<16x128xf32>
    %cst_50 = arith.constant 0.00999999977 : f32
    %104 = vector.broadcast %cst_50 : f32 to vector<16x128xf32>
    %105 = arith.mulf %104, %101 : vector<16x128xf32>
    %106 = arith.select %103, %101, %105 : vector<16x128xi1>, vector<16x128xf32>
    %107 = arith.addf %94, %106 : vector<16x128xf32>
    %108 = vector.extract_strided_slice %52 {offsets = [1, 0], sizes = [1, 128], strides = [1, 1]} : vector<2x128xf32> to vector<1x128xf32>
    %109 = vector.broadcast %108 : vector<1x128xf32> to vector<16x128xf32>
    %110 = arith.subf %107, %109 : vector<16x128xf32>
    %111 = vector.extract_strided_slice %53 {offsets = [1, 0], sizes = [1, 128], strides = [1, 1]} : vector<2x128xf32> to vector<1x128xf32>
    %cst_51 = arith.constant 9.99999974E-6 : f32
    %112 = vector.broadcast %cst_51 : f32 to vector<1x128xf32>
    %113 = arith.addf %111, %112 : vector<1x128xf32>
    %114 = math.rsqrt %113 : vector<1x128xf32>
    %115 = vector.broadcast %114 : vector<1x128xf32> to vector<16x128xf32>
    %116 = arith.mulf %110, %115 : vector<16x128xf32>
    %117 = vector.extract_strided_slice %50 {offsets = [1, 0], sizes = [1, 128], strides = [1, 1]} : vector<2x128xf32> to vector<1x128xf32>
    %118 = vector.broadcast %117 : vector<1x128xf32> to vector<16x128xf32>
    %119 = arith.mulf %116, %118 : vector<16x128xf32>
    %120 = vector.extract_strided_slice %51 {offsets = [1, 0], sizes = [1, 128], strides = [1, 1]} : vector<2x128xf32> to vector<1x128xf32>
    %121 = vector.broadcast %120 : vector<1x128xf32> to vector<16x128xf32>
    %122 = arith.addf %119, %121 : vector<16x128xf32>
    %123 = vector.extract_strided_slice %34 {offsets = [2, 0], sizes = [1, 128], strides = [1, 1]} : vector<3x128xf32> to vector<1x128xf32>
    %124 = vector.broadcast %123 : vector<1x128xf32> to vector<16x128xf32>
    %125 = arith.subf %122, %124 : vector<16x128xf32>
    %126 = vector.extract_strided_slice %35 {offsets = [2, 0], sizes = [1, 128], strides = [1, 1]} : vector<3x128xf32> to vector<1x128xf32>
    %cst_52 = arith.constant 9.99999974E-6 : f32
    %127 = vector.broadcast %cst_52 : f32 to vector<1x128xf32>
    %128 = arith.addf %126, %127 : vector<1x128xf32>
    %129 = math.rsqrt %128 : vector<1x128xf32>
    %130 = vector.broadcast %129 : vector<1x128xf32> to vector<16x128xf32>
    %131 = arith.mulf %125, %130 : vector<16x128xf32>
    %132 = vector.extract_strided_slice %7 {offsets = [0, 512], sizes = [16, 128], strides = [1, 1]} : vector<16x1024xf32> to vector<16x128xf32>
    %133 = arith.mulf %132, %131 : vector<16x128xf32>
    %134 = vector.extract_strided_slice %7 {offsets = [0, 640], sizes = [16, 128], strides = [1, 1]} : vector<16x1024xf32> to vector<16x128xf32>
    %135 = arith.addf %133, %134 : vector<16x128xf32>
    %c0_53 = arith.constant 0 : index
    %c0_54 = arith.constant 0 : index
    %136 = vector.load %arg19[%c0_53, %c0_54] : memref<128x128xbf16, #tpu.memory_space<vmem>>, vector<128x128xbf16>
    %137 = arith.truncf %135 : vector<16x128xf32> to vector<16x128xbf16>
    %cst_55 = arith.constant dense<0.000000e+00> : vector<16x128xf32>
    %138 = tpu.matmul %137, %136, %cst_55 {dimension_numbers = #tpu.dot_dimension_numbers<[1], [0], [0], [1], [0, 0, 1, 1], [], []>} : vector<16x128xbf16>, vector<128x128xbf16>, vector<16x128xf32> -> vector<16x128xf32>
    %c0_56 = arith.constant 0 : index
    %c0_57 = arith.constant 0 : index
    %139 = vector.load %arg20[%c0_56, %c0_57] : memref<1x128xf32, #tpu.memory_space<vmem>>, vector<1x128xf32>
    %140 = vector.broadcast %139 : vector<1x128xf32> to vector<16x128xf32>
    %141 = arith.addf %138, %140 : vector<16x128xf32>
    %c0_58 = arith.constant 0 : index
    %c0_59 = arith.constant 0 : index
    %142 = vector.load %arg21[%c0_58, %c0_59] : memref<1x128xf32, #tpu.memory_space<vmem>>, vector<1x128xf32>
    %143 = vector.broadcast %142 : vector<1x128xf32> to vector<16x128xf32>
    %144 = arith.subf %141, %143 : vector<16x128xf32>
    %c0_60 = arith.constant 0 : index
    %c0_61 = arith.constant 0 : index
    %145 = vector.load %arg22[%c0_60, %c0_61] : memref<1x128xf32, #tpu.memory_space<vmem>>, vector<1x128xf32>
    %cst_62 = arith.constant 9.99999974E-6 : f32
    %146 = vector.broadcast %cst_62 : f32 to vector<1x128xf32>
    %147 = arith.addf %145, %146 : vector<1x128xf32>
    %148 = math.rsqrt %147 : vector<1x128xf32>
    %149 = vector.broadcast %148 : vector<1x128xf32> to vector<16x128xf32>
    %150 = arith.mulf %144, %149 : vector<16x128xf32>
    %151 = vector.extract_strided_slice %7 {offsets = [0, 768], sizes = [16, 128], strides = [1, 1]} : vector<16x1024xf32> to vector<16x128xf32>
    %152 = arith.mulf %151, %150 : vector<16x128xf32>
    %153 = vector.extract_strided_slice %7 {offsets = [0, 896], sizes = [16, 128], strides = [1, 1]} : vector<16x1024xf32> to vector<16x128xf32>
    %154 = arith.addf %152, %153 : vector<16x128xf32>
    %c0_63 = arith.constant 0 : index
    %c0_64 = arith.constant 0 : index
    %155 = vector.load %arg23[%c0_63, %c0_64] : memref<16x128xf32, #tpu.memory_space<vmem>>, vector<16x128xf32>
    tpu.vector_store %arg23[%c0_63, %c0_64], %154 {strides = array<i32>} : memref<16x128xf32, #tpu.memory_space<vmem>>, vector<16x128xf32>,
    return
  }
  func.func @transform_0(%arg0: i32) -> (i32, i32) {
    %c0_i32 = arith.constant 0 : i32
    %c0_i32_0 = arith.constant 0 : i32
    return %arg0, %c0_i32 : i32, i32
  }
  func.func @transform_1(%arg0: i32) -> (i32, i32) {
    %c0_i32 = arith.constant 0 : i32
    %c0_i32_0 = arith.constant 0 : i32
    return %arg0, %c0_i32 : i32, i32
  }
  func.func @transform_2(%arg0: i32) -> (i32, i32) {
    %c0_i32 = arith.constant 0 : i32
    %c0_i32_0 = arith.constant 0 : i32
    %c0_i32_1 = arith.constant 0 : i32
    return %c0_i32, %c0_i32_0 : i32, i32
  }
  func.func @transform_3(%arg0: i32) -> (i32, i32) {
    %c0_i32 = arith.constant 0 : i32
    %c0_i32_0 = arith.constant 0 : i32
    %c0_i32_1 = arith.constant 0 : i32
    return %c0_i32, %c0_i32_0 : i32, i32
  }
  func.func @transform_4(%arg0: i32) -> (i32, i32) {
    %c0_i32 = arith.constant 0 : i32
    %c0_i32_0 = arith.constant 0 : i32
    %c0_i32_1 = arith.constant 0 : i32
    return %c0_i32, %c0_i32_0 : i32, i32
  }
  func.func @transform_5(%arg0: i32) -> (i32, i32) {
    %c0_i32 = arith.constant 0 : i32
    %c0_i32_0 = arith.constant 0 : i32
    %c0_i32_1 = arith.constant 0 : i32
    return %c0_i32, %c0_i32_0 : i32, i32
  }
  func.func @transform_6(%arg0: i32) -> (i32, i32) {
    %c0_i32 = arith.constant 0 : i32
    %c0_i32_0 = arith.constant 0 : i32
    %c0_i32_1 = arith.constant 0 : i32
    return %c0_i32, %c0_i32_0 : i32, i32
  }
  func.func @transform_7(%arg0: i32) -> (i32, i32) {
    %c0_i32 = arith.constant 0 : i32
    %c0_i32_0 = arith.constant 0 : i32
    %c0_i32_1 = arith.constant 0 : i32
    return %c0_i32, %c0_i32_0 : i32, i32
  }
  func.func @transform_8(%arg0: i32) -> (i32, i32) {
    %c0_i32 = arith.constant 0 : i32
    %c0_i32_0 = arith.constant 0 : i32
    %c0_i32_1 = arith.constant 0 : i32
    return %c0_i32, %c0_i32_0 : i32, i32
  }
  func.func @transform_9(%arg0: i32) -> (i32, i32) {
    %c0_i32 = arith.constant 0 : i32
    %c0_i32_0 = arith.constant 0 : i32
    %c0_i32_1 = arith.constant 0 : i32
    return %c0_i32, %c0_i32_0 : i32, i32
  }
  func.func @transform_10(%arg0: i32) -> (i32, i32, i32) {
    %c0_i32 = arith.constant 0 : i32
    %c0_i32_0 = arith.constant 0 : i32
    %c0_i32_1 = arith.constant 0 : i32
    %c0_i32_2 = arith.constant 0 : i32
    return %c0_i32, %c0_i32_0, %c0_i32_1 : i32, i32, i32
  }
  func.func @transform_11(%arg0: i32) -> (i32, i32) {
    %c0_i32 = arith.constant 0 : i32
    %c0_i32_0 = arith.constant 0 : i32
    %c0_i32_1 = arith.constant 0 : i32
    return %c0_i32, %c0_i32_0 : i32, i32
  }
  func.func @transform_12(%arg0: i32) -> (i32, i32) {
    %c0_i32 = arith.constant 0 : i32
    %c0_i32_0 = arith.constant 0 : i32
    %c0_i32_1 = arith.constant 0 : i32
    return %c0_i32, %c0_i32_0 : i32, i32
  }
  func.func @transform_13(%arg0: i32) -> (i32, i32) {
    %c0_i32 = arith.constant 0 : i32
    %c0_i32_0 = arith.constant 0 : i32
    %c0_i32_1 = arith.constant 0 : i32
    return %c0_i32, %c0_i32_0 : i32, i32
  }
  func.func @transform_14(%arg0: i32) -> (i32, i32) {
    %c0_i32 = arith.constant 0 : i32
    %c0_i32_0 = arith.constant 0 : i32
    %c0_i32_1 = arith.constant 0 : i32
    return %c0_i32, %c0_i32_0 : i32, i32
  }
  func.func @transform_15(%arg0: i32) -> (i32, i32) {
    %c0_i32 = arith.constant 0 : i32
    %c0_i32_0 = arith.constant 0 : i32
    %c0_i32_1 = arith.constant 0 : i32
    return %c0_i32, %c0_i32_0 : i32, i32
  }
  func.func @transform_16(%arg0: i32) -> (i32, i32) {
    %c0_i32 = arith.constant 0 : i32
    %c0_i32_0 = arith.constant 0 : i32
    %c0_i32_1 = arith.constant 0 : i32
    return %c0_i32, %c0_i32_0 : i32, i32
  }
  func.func @transform_17(%arg0: i32) -> (i32, i32) {
    %c0_i32 = arith.constant 0 : i32
    %c0_i32_0 = arith.constant 0 : i32
    %c0_i32_1 = arith.constant 0 : i32
    return %c0_i32, %c0_i32_0 : i32, i32
  }
  func.func @transform_18(%arg0: i32) -> (i32, i32) {
    %c0_i32 = arith.constant 0 : i32
    %c0_i32_0 = arith.constant 0 : i32
    %c0_i32_1 = arith.constant 0 : i32
    return %c0_i32, %c0_i32_0 : i32, i32
  }
  func.func @transform_19(%arg0: i32) -> (i32, i32) {
    %c0_i32 = arith.constant 0 : i32
    %c0_i32_0 = arith.constant 0 : i32
    %c0_i32_1 = arith.constant 0 : i32
    return %c0_i32, %c0_i32_0 : i32, i32
  }
  func.func @transform_20(%arg0: i32) -> (i32, i32) {
    %c0_i32 = arith.constant 0 : i32
    %c0_i32_0 = arith.constant 0 : i32
    %c0_i32_1 = arith.constant 0 : i32
    return %c0_i32, %c0_i32_0 : i32, i32
  }
  func.func @transform_21(%arg0: i32) -> (i32, i32) {
    %c0_i32 = arith.constant 0 : i32
    %c0_i32_0 = arith.constant 0 : i32
    %c0_i32_1 = arith.constant 0 : i32
    return %c0_i32, %c0_i32_0 : i32, i32
  }
  func.func @transform_22(%arg0: i32) -> (i32, i32) {
    %c0_i32 = arith.constant 0 : i32
    %c0_i32_0 = arith.constant 0 : i32
    return %arg0, %c0_i32 : i32, i32
  }
}

</mosaic_0001>

<bundles_post_ra>
// kernel: tpu_custom_call.1
= control target key start
LH: loop header
LB: loop body
LE: loop exit
PB: predicated region body
PF: predicated region fallthrough
CT: control target
= control target key end

     0   :  { %s3373_s0 = inlined_call_operand.vmem [shape: f32[64,32], index: 0, kind: input, shape index: {}]   ;;  %s3374_s1 = inlined_call_operand.vmem [shape: f32[64,16], index: 1, kind: input, shape index: {}]   ;;  %s3375_s2 = inlined_call_operand.hbm [shape: bf16[32,128], index: 2, kind: input, shape index: {}]   ;;  %s3376_s3 = inlined_call_operand.vmem [shape: f32[1,128], index: 3, kind: input, shape index: {}]   ;;  %s3377_s4 = inlined_call_operand.hbm [shape: f32[1,128], index: 4, kind: input, shape index: {}]   ;;  %s3378_s5 = inlined_call_operand.hbm [shape: f32[1,128], index: 5, kind: input, shape index: {}]   ;;  %s3379_s6 = inlined_call_operand.hbm [shape: f32[1,128], index: 6, kind: input, shape index: {}]   ;;  %s3380_s7 = inlined_call_operand.hbm [shape: f32[1,128], index: 7, kind: input, shape index: {}]   ;;  %s3381_s8 = inlined_call_operand.vmem [shape: bf16[16,1024], index: 8, kind: input, shape index: {}]   ;;  %s3382_s9 = inlined_call_operand.hbm [shape: f32[1,1024], index: 9, kind: input, shape index: {}]   ;;  %s3383_s10 = inlined_call_operand.vmem [shape: bf16[2,128,128], index: 10, kind: input, shape index: {}]   ;;  %s3384_s11 = inlined_call_operand.hbm [shape: f32[2,128], index: 11, kind: input, shape index: {}]   ;;  %s3385_s12 = inlined_call_operand.hbm [shape: f32[2,128], index: 12, kind: input, shape index: {}]   ;;  %s3386_s13 = inlined_call_operand.hbm [shape: f32[2,128], index: 13, kind: input, shape index: {}]   ;;  %s3387_s14 = inlined_call_operand.hbm [shape: f32[2,128], index: 14, kind: input, shape index: {}]   ;;  %s3388_s15 = inlined_call_operand.hbm [shape: f32[2,128], index: 15, kind: input, shape index: {}]   ;;  %s3389_s16 = inlined_call_operand.vmem [shape: f32[3,128], index: 16, kind: input, shape index: {}]   ;;  %s3390_s17 = inlined_call_operand.vmem [shape: f32[3,128], index: 17, kind: input, shape index: {}]   ;;  %s3391_s18 = inlined_call_operand.hbm [shape: bf16[128,128], index: 18, kind: input, shape index: {}]   ;;  %s3392_s19 = inlined_call_operand.vmem [shape: f32[1,128], index: 19, kind: input, shape index: {}]   ;;  %s3393_s20 = inlined_call_operand.vmem [shape: f32[1,128], index: 20, kind: input, shape index: {}]   ;;  %s3394_s21 = inlined_call_operand.vmem [shape: f32[1,128], index: 21, kind: input, shape index: {}]   ;;  %s3395_s22 = inlined_call_operand.hbm [shape: f32[64,128], index: 22, kind: output, shape index: {}]  }
   0x1   :  { %3408 = sst [smem:[#allocation38_spill]] %s3373_s0 }
   0x2   :  { %3409 = sst [smem:[#allocation39_spill]] %s3374_s1 }
   0x3   :  { %3410 = sst [smem:[#allocation40_spill]] %s3375_s2 }
   0x4   :  { %3411 = sst [smem:[#allocation41_spill]] %s3376_s3 }
   0x5   :  { %3412 = sst [smem:[#allocation42_spill]] %s3377_s4 }
   0x6   :  { %3413 = sst [smem:[#allocation43_spill]] %s3378_s5 }
   0x7   :  { %3414 = sst [smem:[#allocation44_spill]] %s3379_s6 }
   0x8   :  { %3415 = sst [smem:[#allocation45_spill]] %s3382_s9 }
   0x9   :  { %3416 = sst [smem:[#allocation46_spill]] %s3395_s22 }
   0xa   :  { %27 = vsyncpa [#allocation3], 0 }
   0xb   :  { %28 = vsyncpa [#allocation6], 0 }
   0xc   :  { %29 = vsyncpa [#allocation9], 0 }
   0xd   :  { %30 = vsyncpa [#allocation12], 0 }
   0xe   :  { %31 = vsyncpa [#allocation15], 0 }
   0xf   :  { %32 = vsyncpa [#allocation18], 0 }
  0x10   :  { %33 = vsyncpa [#allocation21], 0 }
  0x11   :  { %34 = vsyncpa [#allocation4], 0 }
  0x12   :  { %36 = vsyncpa [#allocation4 + $0x1], 0  ;;  %s2871_s3 = smov 0   ;;  %s2873_s28 = smov 0  }
  0x13   :  { %s2875_s29 = smov 0   ;;  %s2877_s30 = smov 0  }
  0x14 LB: > { %3417 = sst [smem:[#allocation31_spill]] %s2722_s3  ;;  %s2892_s4 = sadd.s32 4294967295, %s2734_s30   ;;  %s2734_s30 = sphi %s2877_s30, %s3459_s30   ;;  %s2730_s29 = sphi %s2875_s29, %s3464_s29   ;;  %s2726_s28 = sphi %s2873_s28, %s3463_s28   ;;  %s2722_s3 = sphi %s2871_s3, %s3462_s3  }
  0x15   : > { %3418 = sst [smem:[#allocation32_spill]] %s2730_s29  ;;  %s1935_s0 = sadd.s32 4294967294, %s2734_s30  }
  0x16   : > { %3419 = sst [smem:[#allocation33_spill]] %s2734_s30  ;;  %s2896_s23 = sadd.s32 1, %s2734_s30  }
  0x17   : > { %3420 = sst [smem:[#allocation34_spill]] %s2896_s23  ;;  %s521_s1 = sadd.s32 1, %s2730_s29 }
  0x18   : > { %s518_s5 = ssub.s32 %s2734_s30, %s2896_s23  ;;  %p531_p0 = scmp.ne.s32.totalorder %s2730_s29, %s2726_s28 }
  0x19   : > { %p519_p1 = scmp.eq.s32.totalorder %s518_s5, 0  ;;  %p532_p2 = scmp.eq.s32.totalorder %s2892_s4, 3 }
  0x1a   : > { %p537_p3 = scmp.ne.s32.totalorder %s2726_s28, %s2722_s3  ;;  %p538_p4 = scmp.eq.s32.totalorder %s1935_s0, 3 }
  0x1b   : > { %s2907_s24 = scalar_select %p519_p1, %s2730_s29, %s521_s1  }
  0x1c   : > { %p2909_p5 = por %p532_p2, %p531_p0  ;;  %p2913_p6 = por %p538_p4, %p537_p3 }
  0x1d   : > { %3421 = sst [smem:[#allocation35_spill]] %s2907_s24  ;;  %p1936_p7 = scmp.ge.s32.totalorder %s2734_s30, 1 }
  0x1e   : > { %s3422_s6 = scalar_select %p2909_p5, 1, 0 }
  0x1f   : > { %s3424_s25 = scalar_select %p2913_p6, 1, 0 }
  0x20   : > { %3423 = sst [smem:[#allocation36_spill]] %s3422_s6  ;;  %p545_p8 = scmp.lt.s32.totalorder %s2734_s30, 5 }
  0x21   : > { %3425 = sst [smem:[#allocation37_spill]] %s3424_s25  ;;  %p3402_p9 = scmp.eq.s32.totalorder %s2892_s4, 0 }
  0x22   : > { %p2920_p10 = pnand %p1936_p7, %p545_p8  ;;  %s2736_s2 = smov [#allocation5]  }
  0x23   : > { %s574_s27 = sshll.u32 %s2736_s2, 4  ;;  %s2737_s0 = smov [#allocation8]   ;;  %s575_s27 = int_to_ptr.vmem [resolvable:$true] %s574_s27 }
  0x24   : > { %s3426_s26 = scalar_select %p2920_p10, 1, 0 }
  0x25   : > { %p2183_p11 = pneg %p2920_p10  ;;  %s596_s1 = sshll.u32 %s2737_s0, 4  ;;  %s597_s1 = int_to_ptr.vmem [resolvable:$true] %s596_s1 }
  0x26   : > { %s2738_s24 = smov [#allocation11]   ;;  %s2345_s2 = scalar_lea.vmem %s575_s27, 16 }
  0x27   : > { %p2928_p12 = pnand %p3402_p9, %p2183_p11  ;;  %s621_s29 = sshll.u32 %s2738_s24, 4  ;;  %s2932_s29 = int_to_ptr.vmem [resolvable:$true] %s621_s29 }
  0x28   : > { %p2346_p0 = scmp.ne.s32.totalorder %s575_s27, %s2345_s2  ;;  %s2352_s0 = scalar_lea.vmem %s575_s27, 32 }
  0x29   : > { %p2936_p13 = pneg %p2928_p12  ;;  %p2353_p3 = scmp.lt.s32.totalorder %s575_s27, %s575_s27 }
  0x2a   : > { %p2354_p4 = scmp.lt.s32.totalorder %s2352_s0, %s2345_s2 }
  0x2b   : > { %p2348_p1 = pnand %p2346_p0, %p2936_p13 }
  0x2c   : > { %p2355_p7 = por %p2354_p4, %p2353_p3 }
  0x2d   : > { %p2349_p2 = pneg %p2348_p1 }
  0x2f   : > { %p2356_p8 = pnand %p2355_p7, %p2349_p2 }
  0x31   : > { %2359 = shalt.err (!%p2356_p8)
}
  0x32   : > { %s3429_s3 = sld [smem:[#allocation42_spill]]  ;;  %s2371_s30 = scalar_lea.vmem %s597_s1, 16 }
  0x33   : > { %p2372_p11 = scmp.ne.s32.totalorder %s597_s1, %s2371_s30  ;;  %s2378_s22 = scalar_lea.vmem %s597_s1, 32 }
  0x34   : > { %p2379_p0 = scmp.lt.s32.totalorder %s597_s1, %s597_s1  ;;  %p2380_p1 = scmp.lt.s32.totalorder %s2378_s22, %s2371_s30 }
  0x35   : > { %p2374_p9 = pnand %p2372_p11, %p2936_p13 }
  0x36   : > { %p2381_p5 = por %p2380_p1, %p2379_p0 }
  0x37   : > { %p2375_p6 = pneg %p2374_p9 }
  0x38   : > { %2189 = dma.hbm_to_vmem [thread:$0]  (!%p2928_p12), %s3429_s3, 16, %s575_s27, [#allocation6]  }
  0x39   : > { %p2382_p10 = pnand %p2381_p5, %p2375_p6 }
  0x3b   : > { %2385 = shalt.err (!%p2382_p10)
}
  0x3c   : > { %s3430_s6 = sld [smem:[#allocation44_spill]]  ;;  %s2397_s3 = scalar_lea.vmem %s2932_s29, 128 }
  0x3d   : > { %p2398_p2 = scmp.ne.s32.totalorder %s2932_s29, %s2397_s3  ;;  %p2405_p4 = scmp.lt.s32.totalorder %s2932_s29, %s2932_s29 }
  0x3e   : > { %p2406_p7 = scmp.lt.s32.totalorder %s2397_s3, %s2397_s3 }
  0x3f   : > { %p2400_p9 = pnand %p2398_p2, %p2936_p13 }
  0x40   : > { %p2407_p5 = por %p2406_p7, %p2405_p4 }
  0x41   : > { %p2401_p3 = pneg %p2400_p9 }
  0x42   : > { %2195 = dma.hbm_to_vmem [thread:$0]  (!%p2928_p12), %s3430_s6, 16, %s597_s1, [#allocation9]  }
  0x43   : > { %p2408_p6 = pnand %p2407_p5, %p2401_p3 }
  0x45   : > { %2411 = shalt.err (!%p2408_p6)
}
  0x46   : > { %s3431_s9 = sld [smem:[#allocation45_spill]]  ;;  %s2739_s6 = smov [#allocation14]  }
  0x47   : > { %s646_s25 = sshll.u32 %s2739_s6, 4  ;;  %s2740_s27 = smov [#allocation17]   ;;  %s647_s25 = int_to_ptr.vmem [resolvable:$true] %s646_s25 }
  0x48   : > { %s668_s1 = sshll.u32 %s2740_s27, 4  ;;  %s2423_s24 = scalar_lea.vmem %s647_s25, 32  ;;  %s669_s1 = int_to_ptr.vmem [resolvable:$true] %s668_s1 }
  0x49   : > { %p2424_p10 = scmp.ne.s32.totalorder %s647_s25, %s2423_s24  ;;  %p2431_p0 = scmp.lt.s32.totalorder %s647_s25, %s647_s25 }
  0x4a   : > { %p2432_p1 = scmp.lt.s32.totalorder %s2423_s24, %s2423_s24 }
  0x4b   : > { %p2426_p8 = pnand %p2424_p10, %p2936_p13 }
  0x4c   : > { %2201 = dma.hbm_to_vmem [thread:$0]  (!%p2928_p12), %s3431_s9, 128, %s2932_s29, [#allocation12]  }
  0x4d   : > { %p2427_p11 = pneg %p2426_p8  ;;  %p2433_p2 = por %p2432_p1, %p2431_p0 }
  0x4f   : > { %p2434_p9 = pnand %p2433_p2, %p2427_p11 }
  0x51   : > { %2437 = shalt.err (!%p2434_p9)
}
  0x52   : > { %2207 = dma.hbm_to_vmem [thread:$0]  (!%p2928_p12), %s3385_s12, 32, %s647_s25, [#allocation15]  }
  0x53   : > { %s2449_s29 = scalar_lea.vmem %s669_s1, 32  ;;  %p2457_p5 = scmp.lt.s32.totalorder %s669_s1, %s669_s1 }
  0x54   : > { %p2450_p3 = scmp.ne.s32.totalorder %s669_s1, %s2449_s29  ;;  %p2458_p6 = scmp.lt.s32.totalorder %s2449_s29, %s2449_s29 }
  0x56   : > { %p2452_p4 = pnand %p2450_p3, %p2936_p13  ;;  %p2459_p10 = por %p2458_p6, %p2457_p5 }
  0x58   : > { %p2453_p7 = pneg %p2452_p4 }
  0x5a   : > { %p2460_p8 = pnand %p2459_p10, %p2453_p7 }
  0x5c   : > { %2463 = shalt.err (!%p2460_p8)
}
  0x5d   : > { %2213 = dma.hbm_to_vmem [thread:$0]  (!%p2928_p12), %s3387_s14, 32, %s669_s1, [#allocation18]  }
  0x5e   : > { %s2741_s30 = smov [#allocation2]  }
  0x5f   : > { %s557_s6 = sshll.u32 %s2741_s30, 4  ;;  %s558_s6 = int_to_ptr.vmem [resolvable:$true] %s557_s6 }
  0x60   : > { %s2475_s25 = scalar_lea.vmem %s558_s6, 256  ;;  %p2483_p2 = scmp.lt.s32.totalorder %s558_s6, %s558_s6 }
  0x61   : > { %p2476_p11 = scmp.ne.s32.totalorder %s558_s6, %s2475_s25  ;;  %p2484_p9 = scmp.lt.s32.totalorder %s2475_s25, %s2475_s25 }
  0x63   : > { %p2478_p0 = pnand %p2476_p11, %p2936_p13  ;;  %p2485_p3 = por %p2484_p9, %p2483_p2 }
  0x65   : > { %p2479_p1 = pneg %p2478_p0 }
  0x67   : > { %p2486_p4 = pnand %p2485_p3, %p2479_p1 }
  0x69   : > { %2489 = shalt.err (!%p2486_p4)
}
  0x6a   : > { %s2742_s27 = smov 64   ;;  %s2743_s24 = smov 4  }
  0x6b   : > { %s3432_s0 = sld [smem:[#allocation40_spill]]  ;;  %s2744_s29 = smov [#allocation7]  }
  0x6c   : > { %s585_s3 = sshll.u32 %s2744_s29, 4  ;;  %s2745_s22 = smov [#allocation10]   ;;  %s586_s3 = int_to_ptr.vmem [resolvable:$true] %s585_s3 }
  0x6d   : > { %s607_s30 = sshll.u32 %s2745_s22, 4  ;;  %s2501_s25 = scalar_lea.vmem %s586_s3, 16  ;;  %s608_s30 = int_to_ptr.vmem [resolvable:$true] %s607_s30 }
  0x6e   : > { %p2502_p7 = scmp.ne.s32.totalorder %s586_s3, %s2501_s25  ;;  %s2508_s9 = scalar_lea.vmem %s586_s3, 32 }
  0x6f   : > { %p2509_p10 = scmp.lt.s32.totalorder %s586_s3, %s586_s3  ;;  %p2510_p8 = scmp.lt.s32.totalorder %s2508_s9, %s2501_s25 }
  0x70   : > { %p2504_p5 = pnand %p2502_p7, %p2936_p13 }
  0x71   : > { %2186 = dma.hbm_to_vmem [thread:$0]  (!%p2928_p12), %s3432_s0, 256, %s558_s6, [#allocation3], %s2742_s27, %s2742_s27, %s2743_s24  }
  0x72   : > { %p2505_p6 = pneg %p2504_p5  ;;  %p2511_p11 = por %p2510_p8, %p2509_p10 }
  0x74   : > { %p2512_p0 = pnand %p2511_p11, %p2505_p6 }
  0x76   : > { %2515 = shalt.err (!%p2512_p0)
}
  0x77   : > { %s3433_s2 = sld [smem:[#allocation43_spill]]  ;;  %s2527_s0 = scalar_lea.vmem %s608_s30, 16 }
  0x78   : > { %p2528_p1 = scmp.ne.s32.totalorder %s608_s30, %s2527_s0  ;;  %s2534_s29 = scalar_lea.vmem %s608_s30, 32 }
  0x79   : > { %p2535_p3 = scmp.lt.s32.totalorder %s608_s30, %s608_s30  ;;  %p2536_p4 = scmp.lt.s32.totalorder %s2534_s29, %s2527_s0 }
  0x7a   : > { %p2530_p2 = pnand %p2528_p1, %p2936_p13 }
  0x7b   : > { %p2537_p7 = por %p2536_p4, %p2535_p3 }
  0x7c   : > { %p2531_p9 = pneg %p2530_p2 }
  0x7d   : > { %2192 = dma.hbm_to_vmem [thread:$0]  (!%p2928_p12), %s3433_s2, 16, %s586_s3, [#allocation6]  }
  0x7e   : > { %p2538_p5 = pnand %p2537_p7, %p2531_p9 }
  0x80   : > { %2541 = shalt.err (!%p2538_p5)
}
  0x81   : > { %2198 = dma.hbm_to_vmem [thread:$0]  (!%p2928_p12), %s3380_s7, 16, %s608_s30, [#allocation9]  }
  0x82   : > { %s2746_s25 = smov [#allocation13]   ;;  %s2747_s6 = smov [#allocation16]  }
  0x83   : > { %s635_s3 = sshll.u32 %s2746_s25, 4  ;;  %s657_s1 = sshll.u32 %s2747_s6, 4  ;;  %s636_s3 = int_to_ptr.vmem [resolvable:$true] %s635_s3  ;;  %s658_s1 = int_to_ptr.vmem [resolvable:$true] %s657_s1 }
  0x84   : > { %s2553_s2 = scalar_lea.vmem %s636_s3, 32  ;;  %p2561_p11 = scmp.lt.s32.totalorder %s636_s3, %s636_s3 }
  0x85   : > { %p2554_p6 = scmp.ne.s32.totalorder %s636_s3, %s2553_s2  ;;  %p2562_p0 = scmp.lt.s32.totalorder %s2553_s2, %s2553_s2 }
  0x87   : > { %p2556_p10 = pnand %p2554_p6, %p2936_p13  ;;  %p2563_p1 = por %p2562_p0, %p2561_p11 }
  0x89   : > { %p2557_p8 = pneg %p2556_p10 }
  0x8b   : > { %p2564_p2 = pnand %p2563_p1, %p2557_p8 }
  0x8d   : > { %2567 = shalt.err (!%p2564_p2)
}
  0x8e   : > { %2204 = dma.hbm_to_vmem [thread:$0]  (!%p2928_p12), %s3384_s11, 32, %s636_s3, [#allocation12]  }
  0x8f   : > { %s2579_s29 = scalar_lea.vmem %s658_s1, 32  ;;  %p2587_p7 = scmp.lt.s32.totalorder %s658_s1, %s658_s1 }
  0x90   : > { %p2580_p9 = scmp.ne.s32.totalorder %s658_s1, %s2579_s29  ;;  %p2588_p5 = scmp.lt.s32.totalorder %s2579_s29, %s2579_s29 }
  0x92   : > { %p2582_p3 = pnand %p2580_p9, %p2936_p13  ;;  %p2589_p6 = por %p2588_p5, %p2587_p7 }
  0x94   : > { %p2583_p4 = pneg %p2582_p3 }
  0x96   : > { %p2590_p10 = pnand %p2589_p6, %p2583_p4 }
  0x98   : > { %2593 = shalt.err (!%p2590_p10)
}
  0x99   : > { %2210 = dma.hbm_to_vmem [thread:$0]  (!%p2928_p12), %s3386_s13, 32, %s658_s1, [#allocation15]  }
  0x9a   : > { %s2748_s25 = smov [#allocation19]   ;;  %s2749_s3 = smov [#allocation20]  }
  0x9b   : > { %s679_s6 = sshll.u32 %s2748_s25, 4  ;;  %s695_s2 = sshll.u32 %s2749_s3, 4  ;;  %s680_s6 = int_to_ptr.vmem [resolvable:$true] %s679_s6  ;;  %s696_s2 = int_to_ptr.vmem [resolvable:$true] %s695_s2 }
  0x9c   : > { %s2605_s0 = scalar_lea.vmem %s680_s6, 32  ;;  %p2613_p1 = scmp.lt.s32.totalorder %s680_s6, %s680_s6 }
  0x9d   : > { %p2606_p8 = scmp.ne.s32.totalorder %s680_s6, %s2605_s0  ;;  %p2614_p2 = scmp.lt.s32.totalorder %s2605_s0, %s2605_s0 }
  0x9f   : > { %p2608_p11 = pnand %p2606_p8, %p2936_p13  ;;  %p2615_p9 = por %p2614_p2, %p2613_p1 }
  0xa1   : > { %p2609_p0 = pneg %p2608_p11 }
  0xa3   : > { %p2616_p3 = pnand %p2615_p9, %p2609_p0 }
  0xa5   : > { %2619 = shalt.err (!%p2616_p3)
}
  0xa6   : > { %2216 = dma.hbm_to_vmem [thread:$0]  (!%p2928_p12), %s3388_s15, 32, %s680_s6, [#allocation18]  }
  0xa7   : > { %s2631_s29 = scalar_lea.vmem %s696_s2, 1024  ;;  %p2639_p6 = scmp.lt.s32.totalorder %s696_s2, %s696_s2 }
  0xa8   : > { %p2632_p4 = scmp.ne.s32.totalorder %s696_s2, %s2631_s29  ;;  %p2640_p10 = scmp.lt.s32.totalorder %s2631_s29, %s2631_s29 }
  0xaa   : > { %p2634_p7 = pnand %p2632_p4, %p2936_p13  ;;  %p2641_p8 = por %p2640_p10, %p2639_p6 }
  0xac   : > { %p2635_p5 = pneg %p2634_p7 }
  0xae   : > { %p2642_p11 = pnand %p2641_p8, %p2635_p5 }
  0xb0   : > { %2645 = shalt.err (!%p2642_p11)
}
  0xb1   : > { %2219 = dma.hbm_to_vmem [thread:$0]  (!%p2928_p12), %s3391_s18, 1024, %s696_s2, [#allocation21], %s2742_s27, %s2742_s27, %s2743_s24  }
  0xb2   : > { %p3434_p0 = scmp.ne.s32.totalorder %s3426_s26, 0 }
  0xb3   : > { %p3435_p13 = scmp.eq.s32.totalorder (!%p3434_p0), %s2892_s4, 0 }
  0xb4   : > { %738 = sbr.rel (%p3434_p0) target bundleno = 1124 (0x464), region = 108 }
  0xb9   : > { %2689 = dma.done.wait (%p3435_p13), [#allocation3], 256   ;;  %p3436_p1 = pmov %p3435_p13 }
  0xbb   : > { %2691 = vsyncadd (%p3436_p1), [#allocation3], 4294967040  ;;  %p3437_p2 = pmov %p3436_p1 }
  0xbc   : > { %p3438_p9 = pmov %p3436_p1 }
  0xbd   : > { %2693 = dma.done.wait (%p3437_p2), [#allocation6], 32  }
  0xbe   : > { %2695 = vsyncadd (%p3438_p9), [#allocation6], 4294967264  ;;  %p3439_p3 = pmov %p3436_p1 }
  0xbf   : > { %p3440_p12 = pmov %p3436_p1 }
  0xc0   : > { %2697 = dma.done.wait (%p3439_p3), [#allocation9], 32  }
  0xc1   : > { %2699 = vsyncadd (%p3440_p12), [#allocation9], 4294967264  ;;  %p3441_p4 = pmov %p3436_p1 }
  0xc2   : > { %p3442_p7 = pmov %p3436_p1 }
  0xc3   : > { %2701 = dma.done.wait (%p3441_p4), [#allocation12], 160  }
  0xc4   : > { %2703 = vsyncadd (%p3442_p7), [#allocation12], 4294967136  ;;  %p3443_p5 = pmov %p3436_p1 }
  0xc5   : > { %p3444_p6 = pmov %p3436_p1 }
  0xc6   : > { %2705 = dma.done.wait (%p3443_p5), [#allocation15], 64  }
  0xc7   : > { %2707 = vsyncadd (%p3444_p6), [#allocation15], 4294967232  ;;  %p3445_p10 = pmov %p3436_p1 }
  0xc8   : > { %p3446_p8 = pmov %p3436_p1 }
  0xc9   : > { %2709 = dma.done.wait (%p3445_p10), [#allocation18], 64  }
  0xca   : > { %2711 = vsyncadd (%p3446_p8), [#allocation18], 4294967232  ;;  %p3447_p11 = pmov %p3436_p1 }
  0xcb   : > { %p3448_p0 = pmov %p3436_p1 }
  0xcc   : > { %2713 = dma.done.wait (%p3447_p11), [#allocation21], 1024  }
  0xcd   : > { %2715 = vsyncadd (%p3448_p0), [#allocation21], 4294966272  ;;  %s1964_s23 = sshll.u32 %s2892_s4, 1  ;;  %v2750_v0 = vmov 0   ;;  %s3449_s24 = sld [smem:[#allocation39_spill]]  ;;  %v867_v1 = vld [vmem:[%s3381_s8] sm:$0xff]  ;;  %v878_v22 = vlaneseq }
  0xce   : > { %994 = vmatprep.mubr.bf16.mxu0 %v2750_v0  ;;  %p850_p13 = scmp.lt.s32.totalorder %s1964_s23, 7  ;;  %1123 = vmatprep.mubr.bf16.mxu1 %v2750_v0  ;;  %v871_v2 = vld [vmem:[%s3381_s8 + $0x20] sm:$0xff]  ;;  %v868_v7 = vld [vmem:[%s3381_s8 + $0x8] sm:$0xff]  ;;  %v869_v9 = vld [vmem:[%s3381_s8 + $0x10] sm:$0xff]  ;;  %vm958_vm0 = vcmask 130048   ;;  %v2751_v16 = vmov 0.0  }
  0xcf   : > { %v1969_v3 = vcombine.high %v867_v1, %v871_v2  ;;  %v1968_v4 = vcombine.low %v867_v1, %v871_v2  ;;  %v872_v8 = vld [vmem:[%s3381_s8 + $0x28] sm:$0xff]  ;;  %v873_v12 = vld [vmem:[%s3381_s8 + $0x30] sm:$0xff]  ;;  %s3450_s3 = sld [smem:[#allocation38_spill]]  ;;  %v2301_v20 = vld [vmem:[#allocation2] sm:$0xff]   ;;  %vm2752_vm1 = vmmov 0   ;;  %vm1158_vm2 = vcmask 261120  }
  0xd0   : > { %s3466_s23 = smov (!%p850_p13, %s1964_s23), 7  ;;  %v1971_v11 = vcombine.high %v868_v7, %v872_v8  ;;  %v1970_v13 = vcombine.low %v868_v7, %v872_v8  ;;  %v1973_v14 = vcombine.high %v869_v9, %v873_v12  ;;  %v1972_v15 = vcombine.low %v869_v9, %v873_v12  ;;  %v2300_v17 = vld [vmem:[#allocation2 + $0x8] sm:$0xff]   ;;  %v870_v25 = vld [vmem:[%s3381_s8 + $0x18] sm:$0xff]  ;;  %v3121_v27 = vld [vmem:[%s3389_s16] sm:$0x7]  ;;  %s846_s1 = sand.u32 1, %s2726_s28  }
  0xd1   : > { %s1965_s26 = sshll.u32 %s3466_s23, 3  ;;  %976 = vmatprep.subr.bf16.mxu0 %v1969_v3  ;;  %v3107_v23 = vshrl.u32 %v878_v22, 7  ;;  %v874_v26 = vld [vmem:[%s3381_s8 + $0x38] sm:$0xff]  ;;  %v2303_v32 = vld [vmem:[%s3383_s10 + $0x30] sm:$0xff]   ;;  %v2304_v33 = vld [vmem:[%s3383_s10 + $0x28] sm:$0xff]   ;;  %s1963_s29 = sshll.u32 %s846_s1, 4 }
  0xd2   : > { %977 = vmatpush1.bf16.msra.mxu0 %v1968_v4  ;;  %v1975_v28 = vcombine.high %v870_v25, %v874_v26  ;;  %v1974_v30 = vcombine.low %v870_v25, %v874_v26  ;;  %v2302_v31 = vld [vmem:[%s3383_s10 + $0x38] sm:$0xff]   ;;  %v2305_v34 = vld [vmem:[%s3383_s10 + $0x20] sm:$0xff]   ;;  %v2307_v36 = vld [vmem:[%s3383_s10 + $0x10] sm:$0xff]   ;;  %s3452_s9 = sld [smem:[#allocation36_spill]]  ;;  %s2034_s22 = sshll.u32 %s2892_s4, 8 }
  0xd3   : > { %s859_s25 = scalar_lea.vmem %s3449_s24, %s1965_s26  ;;  %1019 = vmatprep.subr.bf16.mxu0 %v1971_v11  ;;  %v3110_v24 = vsub.s32 2, %v3107_v23  ;;  %v2306_v35 = vld [vmem:[%s3383_s10 + $0x18] sm:$0xff]   ;;  %v2308_v37 = vld [vmem:[%s3383_s10 + $0x8] sm:$0xff]   ;;  %v2309_v38 = vld [vmem:[%s3383_s10] sm:$0xff]   ;;  %v3190_v60 = vsub.s32 0, %v3107_v23  ;;  %s848_s5 = scalar_lea.vmem [#allocation22], %s1963_s29 }
  0xd4   : > { %v865_v5 = vld [vmem:[%s859_s25] sm:$0xff]  ;;  %v866_v6 = vld [vmem:[%s859_s25 + $0x8] sm:$0xff]  ;;  %1105 = vmatprep.subr.bf16.mxu1 %v1975_v28  ;;  %v2310_v39 = vld [vmem:[%s3383_s10 + $0x78] sm:$0xff]   ;;  %s1744_s27 = sshll.u32 %s848_s5, 4  ;;  %s3453_s6 = sld [smem:[#allocation46_spill]]  ;;  %s3331_s27 = int_to_ptr.vmem [resolvable:$true] %s1744_s27 }
  0xd5   : > { %v875_v10 = vpack.c.bf16 %v866_v6, %v865_v5  ;;  %s853_s2 = scalar_lea.vmem %s3450_s3, %s1965_s26  ;;  %v3125_v29 = vrot.slane %v3121_v27, %v3110_v24  ;;  %1106 = vmatpush1.bf16.msra.mxu1 %v1974_v30  ;;  %v1218_v43 = vld [vmem:[#allocation10] sm:$0x1]  ;;  %v1248_v49 = vld [vmem:[%s3390_s17] sm:$0x7]  ;;  %s3451_s3 = sld [smem:[#allocation41_spill]] }
  0xd6   : > { %v863_v18 = vld [vmem:[%s853_s2] sm:$0xff]  ;;  %v864_v19 = vld [vmem:[%s853_s2 + $0x8] sm:$0xff]  ;;  %2073 = vmatprep.subr.bf16.mxu1 %v2751_v16  ;;  %v1219_v46 = vadd.f32 1e-05, %v1218_v43  ;;  %v1255_v51 = vadd.f32 1e-05, %v1248_v49 }
  0xd7   : > { %1976 = vmatmul.mubr.msk.bf16.vlgmr.msra.gmra.mxu0 %vm958_vm0, %v875_v10  ;;  %v1138_v21 = vpack.c.bf16 %v864_v19, %v863_v18  ;;  %v1984_v63 = vld [vmem:[#allocation8] ss:$0 sm:$0xff]  ;;  %v1985_v6 = vld [vmem:[#allocation5] ss:$0 sm:$0xff]  ;;  %s3333_s2 = scalar_lea.sflag [#allocation4], %s846_s1  ;;  %s2646_s4 = scalar_lea.vmem %s3331_s27, 256 }
  0xd8   : > { %1020 = vmatpush1.bf16.msra.mxu0 %v1970_v13  ;;  %1037 = vmatprep.mubr.bf16.mxu0 %v2750_v0  ;;  %2326 = vrsqrt.f32 %v1219_v46  ;;  %v1252_v13 = vrot.slane %v3121_v27, %v3190_v60  ;;  %v2315_v49 = vld [vmem:[%s3383_s10 + $0x50] sm:$0xff]   ;;  %p2647_p1 = scmp.ne.s32.totalorder %s3331_s27, %s2646_s4  ;;  %p3454_p2 = scmp.ne.s32.totalorder %s3452_s9, 0 }
  0xd9   : > { %1062 = vmatprep.subr.bf16.mxu0 %v1973_v14  ;;  %1979 = vmatmul.mubr.msk.bf16.vlgmr.msra.gmra.mxu1 %vm958_vm0, %v875_v10  ;;  %2328 = vrsqrt.f32 %v1255_v51  ;;  %v2316_v51 = vld [vmem:[%s3383_s10 + $0x48] sm:$0xff]   ;;  %s2753_s23 = smov [#allocation22]  }
  0xda   : > { %2089 = vmatprep.mubr.msk.bf16.mxu1 %vm2752_vm1, %v2751_v16  ;;  %2074 = vmatpush3.bf16.msra.mxu1 %v2302_v31  ;;  %p2648_p9 = pnand %p2647_p1, %p3454_p2  ;;  %s2650_s26 = sshll.u32 %s2753_s23, 4  ;;  %s2651_s26 = int_to_ptr.vmem [resolvable:$false] %s2650_s26 }
  0xdb   : > { %2075 = vmatprep.subr.bf16.mxu1 %v2751_v16  ;;  %v1980_v56 = vld [vmem:[%s3451_s3] ss:$0 sm:$0xff]  ;;  %s3329_s3 = scalar_lea.hbm %s3453_s6, %s2034_s22  ;;  %s2652_s0 = scalar_lea.vmem %s2651_s26, 512 }
  0xdc   : > { %p2649_p3 = pneg %p2648_p9  ;;  %p2653_p12 = scmp.lt.s32.totalorder %s3331_s27, %s2651_s26 }
  0xdd   : > { %p2654_p4 = scmp.lt.s32.totalorder %s2652_s0, %s2646_s4 }
  0xde   : > { %2076 = vmatpush3.bf16.msra.mxu1 %v2303_v32 }
  0xdf   : > { %1977 = vmatmul.mubr.msk.bf16.vlgmr.msra.gmra.mxu0 %vm958_vm0, %v875_v10  ;;  %2077 = vmatprep.subr.bf16.mxu1 %v2751_v16  ;;  %p2655_p7 = por %p2654_p4, %p2653_p12 }
  0xe0   : > { %1063 = vmatpush1.bf16.msra.mxu0 %v1972_v15  ;;  %1080 = vmatprep.mubr.bf16.mxu0 %v2750_v0  ;;  %v3197_v15 = vld [vmem:[#allocation11] sm:$0xff] }
  0xe1   : > { %2065 = vmatprep.subr.bf16.mxu0 %v2751_v16  ;;  %p2656_p5 = pnand %p2655_p7, %p2649_p3 }
  0xe2   : > { %2078 = vmatpush3.bf16.msra.mxu1 %v2304_v33 }
  0xe3   : > { %2079 = vmatprep.subr.bf16.mxu1 %v2751_v16 }
  0xe5   : > { %v2327_v58 = vpop.eup %2326 }
  0xe6   : > { %2080 = vmatpush3.bf16.msra.mxu1 %v2305_v34  ;;  %v1225_v0 = vrot.slane %v2327_v58, %v3190_v60  ;;  %v3193_v9 = vpop.eup %2328  ;;  %v1271_v58 = vld [vmem:[#allocation19] sm:$0x3] }
  0xe7   : > { %1978 = vmatmul.mubr.msk.bf16.vlgmr.msra.gmra.mxu0 %vm958_vm0, %v875_v10  ;;  %2081 = vmatprep.subr.bf16.mxu1 %v2751_v16  ;;  %v1986_v10 = vld [vmem:[#allocation7] ss:$0 sm:$0xff]  ;;  %v1260_v19 = vrot.slane %v3193_v9, %v3190_v60 }
  0xe8   : > { %2066 = vmatpush3.bf16.msra.mxu0 %v2300_v17  ;;  %2069 = vmatprep.mubr.msk.bf16.mxu0 %vm2752_vm1, %v2751_v16 }
  0xe9   : > { %2067 = vmatprep.subr.bf16.mxu0 %v2751_v16 }
  0xea   : > { %2082 = vmatpush3.bf16.msra.mxu1 %v2306_v35 }
  0xeb   : > { %2083 = vmatprep.subr.bf16.mxu1 %v2751_v16 }
  0xec   : > { %2068 = vmatpush3.bf16.msra.mxu0 %v2301_v20  ;;  %v881_v20 = vrot.slane %v3197_v15, %v3190_v60 }
  0xed   : > { %2093 = vmatprep.subr.bf16.mxu0 %v2751_v16 }
  0xee   : > { %2084 = vmatpush3.bf16.msra.mxu1 %v2307_v36 }
  0xef   : > { %2070 = vmatmul.mubr.msk.bf16.vlgmr.msra.gmra.mxu0 %vm1158_vm2, %v1138_v21  ;;  %2085 = vmatprep.subr.bf16.mxu1 %v2751_v16  ;;  %v3204_v21 = vsub.s32 1, %v3107_v23 }
  0xf0   : > { %2109 = vmatprep.mubr.msk.bf16.mxu0 %vm2752_vm1, %v2751_v16  ;;  %2094 = vmatpush3.bf16.msra.mxu0 %v2310_v39 }
  0xf1   : > { %2095 = vmatprep.subr.bf16.mxu0 %v2751_v16  ;;  %v885_v31 = vrot.slane %v3197_v15, %v3204_v21 }
  0xf2   : > { %2086 = vmatpush3.bf16.msra.mxu1 %v2308_v37 }
  0xf3   : > { %2087 = vmatprep.subr.bf16.mxu1 %v2751_v16 }
  0xf6   : > { %2088 = vmatpush3.bf16.msra.mxu1 %v2309_v38 }
  0xf7   : > { %2113 = vmatprep.subr.bf16.mxu1 %v2751_v16 }
 0x197   : > { %v996_v40 = vpop.f32.mrf.mxu0 }
 0x198   : > { %v997_v30 = vadd.f32 %v996_v40, %v881_v20  ;;  %v2311_v40 = vld [vmem:[%s3383_s10 + $0x70] sm:$0xff]  }
 0x199   : > { %v998_v41 = vpop.f32.mrf.mxu0  ;;  %2096 = vmatpush3.bf16.msra.mxu0 %v2311_v40 }
 0x19a   : > { %v999_v36 = vadd.f32 %v998_v41, %v885_v31  ;;  %2097 = vmatprep.subr.bf16.mxu0 %v2751_v16  ;;  %v2312_v41 = vld [vmem:[%s3383_s10 + $0x68] sm:$0xff]  }
 0x19b   : > { %v1000_v42 = vpop.f32.mrf.mxu0 }
 0x19c   : > { %v1001_v33 = vadd.f32 %v1000_v42, %v881_v20  ;;  %v2313_v42 = vld [vmem:[%s3383_s10 + $0x60] sm:$0xff]  }
 0x19d   : > { %v1002_v44 = vpop.f32.mrf.mxu0  ;;  %2098 = vmatpush3.bf16.msra.mxu0 %v2312_v41  ;;  %v3260_v20 = vld [vmem:[#allocation16] sm:$0x3] }
 0x19e   : > { %v1003_v37 = vadd.f32 %v1002_v44, %v885_v31  ;;  %2099 = vmatprep.subr.bf16.mxu0 %v2751_v16  ;;  %v2314_v44 = vld [vmem:[%s3383_s10 + $0x58] sm:$0xff]   ;;  %v1413_v31 = vrot.slane %v3260_v20, %v3190_v60 }
 0x19f   : > { %v3167_v45 = vpop.f32.mrf.mxu0 }
 0x1a1   : > { %v3169_v47 = vpop.f32.mrf.mxu0  ;;  %2100 = vmatpush3.bf16.msra.mxu0 %v2313_v42 }
 0x1a2   : > { %2101 = vmatprep.subr.bf16.mxu0 %v2751_v16 }
 0x1a3   : > { %v3171_v48 = vpop.f32.mrf.mxu0 }
 0x1a5   : > { %v3176_v50 = vpop.f32.mrf.mxu0  ;;  %2102 = vmatpush3.bf16.msra.mxu0 %v2314_v44 }
 0x1a6   : > { %2103 = vmatprep.subr.bf16.mxu0 %v2751_v16 }
 0x1a7   : > { %v3178_v52 = vpop.f32.mrf.mxu0 }
 0x1a9   : > { %v3180_v53 = vpop.f32.mrf.mxu0  ;;  %2104 = vmatpush3.bf16.msra.mxu0 %v2315_v49 }
 0x1aa   : > { %2105 = vmatprep.subr.bf16.mxu0 %v2751_v16 }
 0x1ab   : > { %v3182_v54 = vpop.f32.mrf.mxu0 }
 0x1ad   : > { %v3184_v55 = vpop.f32.mrf.mxu0  ;;  %2106 = vmatpush3.bf16.msra.mxu0 %v2316_v51 }
 0x1ae   : > { %2107 = vmatprep.subr.bf16.mxu0 %v2751_v16 }
 0x1af   : > { %v1196_v57 = vpop.f32.mrf.mxu0 }
 0x1b0   : > { %v1197_v59 = vadd.f32 %v1980_v56, %v1196_v57  ;;  %v2318_v57 = vld [vmem:[#allocation20 + $0x38] sm:$0xff]  }
 0x1b1   : > { %v2071_v61 = vpop.f32.mrf.mxu0 }
 0x1b2   : > { %vm1203_vm3 = vcmp.ge.f32.partialorder %v1197_v59, 0.0  ;;  %v1205_v62 = vmul.f32 0.01, %v1197_v59  ;;  %v1396_v61 = vadd.f32 1e-05, %v1271_v58 }
 0x1b3   : > { %v1199_v1 = vpop.f32.mrf.mxu0 }
 0x1b4   : > { %v1207_v2 = vsel %vm1203_vm3, %v1197_v59, %v1205_v62  ;;  %v1200_v3 = vadd.f32 %v1980_v56, %v1199_v1  ;;  %v2317_v56 = vld [vmem:[%s3383_s10 + $0x40] sm:$0xff]   ;;  %v3238_v59 = vpop.f32.mrf.mxu1  ;;  %2330 = vrsqrt.f32 %v1396_v61 }
 0x1b5   : > { %v1216_v4 = vsub.f32 %v1207_v2, %v1984_v63  ;;  %v2072_v5 = vpop.f32.mrf.mxu0  ;;  %2108 = vmatpush3.bf16.msra.mxu0 %v2317_v56 }
 0x1b6   : > { %vm1204_vm4 = vcmp.ge.f32.partialorder %v1200_v3, 0.0  ;;  %v1206_v7 = vmul.f32 0.01, %v1200_v3  ;;  %v3240_v62 = vpop.f32.mrf.mxu1 }
 0x1b7   : > { %v1227_v8 = vmul.f32 %v1225_v0, %v1216_v4  ;;  %v3250_v4 = vld [vmem:[#allocation17] sm:$0x3] }
 0x1b8   : > { %v1208_v11 = vsel %vm1204_vm4, %v1200_v3, %v1206_v7 }
 0x1b9   : > { %v1236_v12 = vmul.f32 %v1985_v6, %v1227_v8  ;;  %v1217_v14 = vsub.f32 %v1208_v11, %v1984_v63  ;;  %v3242_v63 = vpop.f32.mrf.mxu1 }
 0x1bb   : > { %v1245_v17 = vadd.f32 %v1986_v10, %v1236_v12  ;;  %v1228_v18 = vmul.f32 %v1225_v0, %v1217_v14  ;;  %v3244_v0 = vld [vmem:[#allocation13] sm:$0x3]  ;;  %v3248_v2 = vpop.f32.mrf.mxu1  ;;  %v3256_v12 = vld [vmem:[#allocation14] sm:$0x3] }
 0x1bc   : > { %v1292_v1 = vrot.slane %v3244_v0, %v3190_v60 }
 0x1bd   : > { %v1253_v22 = vsub.f32 %v1245_v17, %v1252_v13  ;;  %v1237_v25 = vmul.f32 %v1985_v6, %v1228_v18 }
 0x1bf   : > { %v1246_v26 = vadd.f32 %v1986_v10, %v1237_v25  ;;  %v1261_v28 = vmul.f32 %v1260_v19, %v1253_v22  ;;  %v1393_v10 = vrot.slane %v3250_v4, %v3190_v60 }
 0x1c1   : > { %v1254_v32 = vsub.f32 %v1246_v26, %v1252_v13  ;;  %v1263_v35 = vmul.f32 %v1261_v28, %v997_v30  ;;  %v3252_v7 = vpop.eup %2330  ;;  %v1407_v26 = vrot.slane %v3256_v12, %v3190_v60 }
 0x1c2   : > { %v1401_v18 = vrot.slane %v3252_v7, %v3190_v60 }
 0x1c3   : > { %v1262_v34 = vmul.f32 %v1260_v19, %v1254_v32  ;;  %v1265_v39 = vadd.f32 %v1263_v35, %v999_v36 }
 0x1c5   : > { %v1264_v38 = vmul.f32 %v1262_v34, %v1001_v33  ;;  %v1419_v33 = vrot.slane %v3121_v27, %v3204_v21  ;;  %v892_v34 = vsub.s32 3, %v3107_v23 }
 0x1c7   : > { %v1266_v43 = vadd.f32 %v1264_v38, %v1003_v37  ;;  %v889_v37 = vrot.slane %v3197_v15, %v3110_v24  ;;  %v893_v40 = vrot.slane %v3197_v15, %v892_v34 }
 0x1c9   : > { %v1288_v46 = vpack.c.bf16 %v1266_v43, %v1265_v39  ;;  %v1042_v49 = vadd.f32 %v3169_v47, %v893_v40  ;;  %v2321_v47 = vld [vmem:[#allocation20 + $0x20] sm:$0xff]  }
 0x1cb   : > { %2090 = vmatmul.mubr.bf16.vlgmr.msra.gmra.mxu1 %v1288_v46  ;;  %v1425_v46 = vrot.slane %v3193_v9, %v3204_v21 }
 0x1cc   : > { %2129 = vmatprep.mubr.msk.bf16.mxu1 %vm2752_vm1, %v2751_v16  ;;  %2114 = vmatpush3.bf16.msra.mxu1 %v2318_v57  ;;  %v1044_v57 = vadd.f32 %v3171_v48, %v889_v37  ;;  %v2322_v48 = vld [vmem:[#allocation20 + $0x18] sm:$0xff]  }
 0x1cd   : > { %2115 = vmatprep.subr.bf16.mxu1 %v2751_v16 }
 0x28b   : > { %v1375_v3 = vpop.f32.mrf.mxu1 }
 0x28c   : > { %v1376_v5 = vadd.f32 %v1375_v3, %v1292_v1 }
 0x28d   : > { %v2091_v6 = vpop.f32.mrf.mxu1 }
 0x28e   : > { %vm1382_vm5 = vcmp.ge.f32.partialorder %v1376_v5, 0.0  ;;  %v1384_v8 = vmul.f32 0.01, %v1376_v5 }
 0x28f   : > { %v1378_v11 = vpop.f32.mrf.mxu1 }
 0x290   : > { %v1386_v13 = vsel %vm1382_vm5, %v1376_v5, %v1384_v8  ;;  %v1379_v14 = vadd.f32 %v1378_v11, %v1292_v1  ;;  %v1046_v1 = vadd.f32 %v3176_v50, %v893_v40  ;;  %v2319_v8 = vld [vmem:[#allocation20 + $0x30] sm:$0xff]   ;;  %v2325_v11 = vld [vmem:[#allocation20] sm:$0xff]  }
 0x291   : > { %v1388_v17 = vadd.f32 %v1386_v13, %v1265_v39  ;;  %v2092_v19 = vpop.f32.mrf.mxu1  ;;  %2116 = vmatpush3.bf16.msra.mxu1 %v2319_v8  ;;  %v2323_v50 = vld [vmem:[#allocation20 + $0x10] sm:$0xff]   ;;  %v1453_v13 = vrot.slane %v3244_v0, %v3204_v21  ;;  %v1566_v0 = vrot.slane %v3256_v12, %v3204_v21 }
 0x292   : > { %vm1383_vm6 = vcmp.ge.f32.partialorder %v1379_v14, 0.0  ;;  %v1385_v22 = vmul.f32 0.01, %v1379_v14  ;;  %2117 = vmatprep.subr.bf16.mxu1 %v2751_v16  ;;  %v2028_v8 = vld [vmem:[%s3393_s20] ss:$0 sm:$0xff] }
 0x293   : > { %v1394_v25 = vsub.f32 %v1388_v17, %v1393_v10 }
 0x294   : > { %v1387_v28 = vsel %vm1383_vm6, %v1379_v14, %v1385_v22  ;;  %v1554_v22 = vrot.slane %v3250_v4, %v3204_v21  ;;  %v1572_v4 = vrot.slane %v3260_v20, %v3204_v21 }
 0x295   : > { %v1402_v30 = vmul.f32 %v1401_v18, %v1394_v25  ;;  %v1389_v32 = vadd.f32 %v1387_v28, %v1266_v43  ;;  %v1040_v43 = vadd.f32 %v3167_v45, %v889_v37  ;;  %v2320_v45 = vld [vmem:[#allocation20 + $0x28] sm:$0xff]  }
 0x296   : > { %2118 = vmatpush3.bf16.msra.mxu1 %v2320_v45 }
 0x297   : > { %v1408_v35 = vmul.f32 %v1407_v26, %v1402_v30  ;;  %v1395_v36 = vsub.f32 %v1389_v32, %v1393_v10  ;;  %2119 = vmatprep.subr.bf16.mxu1 %v2751_v16  ;;  %v2324_v10 = vld [vmem:[#allocation20 + $0x8] sm:$0xff]  }
 0x299   : > { %v1414_v38 = vadd.f32 %v1413_v31, %v1408_v35  ;;  %v1403_v39 = vmul.f32 %v1401_v18, %v1395_v36  ;;  %v896_v35 = vsub.s32 4, %v3107_v23 }
 0x29a   : > { %2120 = vmatpush3.bf16.msra.mxu1 %v2321_v47 }
 0x29b   : > { %v1409_v41 = vmul.f32 %v1407_v26, %v1403_v39  ;;  %v1420_v42 = vsub.f32 %v1414_v38, %v1419_v33  ;;  %2121 = vmatprep.subr.bf16.mxu1 %v2751_v16  ;;  %v900_v38 = vsub.s32 5, %v3107_v23  ;;  %v897_v40 = vrot.slane %v3197_v15, %v896_v35 }
 0x29d   : > { %v1415_v44 = vadd.f32 %v1413_v31, %v1409_v41  ;;  %v1426_v27 = vmul.f32 %v1425_v46, %v1420_v42  ;;  %v1560_v31 = vrot.slane %v3252_v7, %v3204_v21  ;;  %v1584_v7 = vrot.slane %v3193_v9, %v3110_v24 }
 0x29e   : > { %2122 = vmatpush3.bf16.msra.mxu1 %v2322_v48  ;;  %v901_v12 = vrot.slane %v3197_v15, %v900_v38  ;;  %v1087_v24 = vadd.f32 %v3182_v54, %v897_v40  ;;  %v2019_v54 = vld [vmem:[%s3392_s19] ss:$0 sm:$0xff] }
 0x29f   : > { %v1421_v51 = vsub.f32 %v1415_v44, %v1419_v33  ;;  %v1428_v56 = vmul.f32 %v1426_v27, %v1040_v43  ;;  %2123 = vmatprep.subr.bf16.mxu1 %v2751_v16  ;;  %v1083_v27 = vadd.f32 %v3178_v52, %v897_v40  ;;  %v1713_v52 = vld [vmem:[%s3394_s21] sm:$0x1] }
 0x2a1   : > { %v1427_v58 = vmul.f32 %v1425_v46, %v1421_v51  ;;  %v1430_v61 = vadd.f32 %v1428_v56, %v1042_v49  ;;  %v1085_v49 = vadd.f32 %v3180_v53, %v901_v12 }
 0x2a2   : > { %2124 = vmatpush3.bf16.msra.mxu1 %v2323_v50 }
 0x2a3   : > { %v1429_v3 = vmul.f32 %v1427_v58, %v1044_v57  ;;  %2125 = vmatprep.subr.bf16.mxu1 %v2751_v16  ;;  %v1089_v58 = vadd.f32 %v3184_v55, %v901_v12  ;;  %v908_v55 = vsub.s32 7, %v3107_v23 }
 0x2a5   : > { %v1431_v5 = vadd.f32 %v1429_v3, %v1046_v1 }
 0x2a6   : > { %2126 = vmatpush3.bf16.msra.mxu1 %v2324_v10  ;;  %v909_v10 = vrot.slane %v3197_v15, %v908_v55 }
 0x2a7   : > { %v1449_v6 = vpack.c.bf16 %v1431_v5, %v1430_v61  ;;  %2127 = vmatprep.subr.bf16.mxu1 %v2751_v16 }
 0x2a9   : > { %2110 = vmatmul.mubr.bf16.vlgmr.msra.gmra.mxu0 %v1449_v6 }
 0x2aa   : > { %2128 = vmatpush3.bf16.msra.mxu1 %v2325_v11 }
 0x369   : > { %v1536_v14 = vpop.f32.mrf.mxu0 }
 0x36a   : > { %v1537_v17 = vadd.f32 %v1536_v14, %v1453_v13 }
 0x36b   : > { %v2111_v18 = vpop.f32.mrf.mxu0 }
 0x36c   : > { %vm1543_vm7 = vcmp.ge.f32.partialorder %v1537_v17, 0.0  ;;  %v1545_v19 = vmul.f32 0.01, %v1537_v17 }
 0x36d   : > { %v1539_v25 = vpop.f32.mrf.mxu0 }
 0x36e   : > { %v1547_v26 = vsel %vm1543_vm7, %v1537_v17, %v1545_v19  ;;  %v1540_v28 = vadd.f32 %v1539_v25, %v1453_v13  ;;  %v1128_v19 = vadd.f32 %v3240_v62, %v909_v10 }
 0x36f   : > { %v1549_v30 = vadd.f32 %v1547_v26, %v1430_v61  ;;  %v2112_v16 = vpop.f32.mrf.mxu0 }
 0x370   : > { %vm1544_vm8 = vcmp.ge.f32.partialorder %v1540_v28, 0.0  ;;  %v1546_v32 = vmul.f32 0.01, %v1540_v28 }
 0x371   : > { %v1555_v33 = vsub.f32 %v1549_v30, %v1554_v22 }
 0x372   : > { %v1548_v34 = vsel %vm1544_vm8, %v1540_v28, %v1546_v32 }
 0x373   : > { %v1561_v36 = vmul.f32 %v1560_v31, %v1555_v33  ;;  %v1550_v37 = vadd.f32 %v1548_v34, %v1431_v5  ;;  %v1714_v5 = vadd.f32 1e-05, %v1713_v52 }
 0x375   : > { %v1567_v39 = vmul.f32 %v1566_v0, %v1561_v36  ;;  %v1556_v46 = vsub.f32 %v1550_v37, %v1554_v22  ;;  %2332 = vrsqrt.f32 %v1714_v5 }
 0x377   : > { %v1573_v41 = vadd.f32 %v1572_v4, %v1567_v39  ;;  %v1562_v42 = vmul.f32 %v1560_v31, %v1556_v46 }
 0x379   : > { %v1568_v43 = vmul.f32 %v1566_v0, %v1562_v42  ;;  %v1579_v44 = vsub.f32 %v1573_v41, %v3125_v29 }
 0x37b   : > { %v1574_v21 = vadd.f32 %v1572_v4, %v1568_v43  ;;  %v1585_v20 = vmul.f32 %v1584_v7, %v1579_v44 }
 0x37d   : > { %v1580_v51 = vsub.f32 %v1574_v21, %v3125_v29  ;;  %v1587_v56 = vmul.f32 %v1585_v20, %v1083_v27  ;;  %v904_v29 = vsub.s32 6, %v3107_v23 }
 0x37f   : > { %v1586_v9 = vmul.f32 %v1584_v7, %v1580_v51  ;;  %v1589_v57 = vadd.f32 %v1587_v56, %v1085_v49  ;;  %v905_v45 = vrot.slane %v3197_v15, %v904_v29  ;;  %v1132_v15 = vadd.f32 %v3248_v2, %v909_v10 }
 0x381   : > { %v1588_v61 = vmul.f32 %v1586_v9, %v1087_v24  ;;  %v1126_v14 = vadd.f32 %v3238_v59, %v905_v45  ;;  %v1130_v26 = vadd.f32 %v3242_v63, %v905_v45 }
 0x382   : > { %v2333_v53 = vpop.eup %2332 }
 0x383   : > { %v1590_v1 = vadd.f32 %v1588_v61, %v1089_v58  ;;  %v1720_v48 = vrot.slane %v2333_v53, %v3190_v60 }
 0x385   : > { %v1607_v3 = vpack.c.bf16 %v1590_v1, %v1589_v57 }
 0x387   : > { %2130 = vmatmul.mubr.bf16.vlgmr.msra.gmra.mxu1 %v1607_v3 }
 0x447   : > { %v1697_v6 = vpop.f32.mrf.mxu1 }
 0x448   : > { %v1698_v47 = vadd.f32 %v2019_v54, %v1697_v6 }
 0x449   : > { %v2131_v50 = vpop.f32.mrf.mxu1 }
 0x44a   : > { %v1711_v11 = vsub.f32 %v1698_v47, %v2028_v8 }
 0x44b   : > { %v1700_v13 = vpop.f32.mrf.mxu1 }
 0x44c   : > { %v1722_v23 = vmul.f32 %v1720_v48, %v1711_v11  ;;  %v1701_v17 = vadd.f32 %v2019_v54, %v1700_v13 }
 0x44d   : > { %v2132_v18 = vpop.f32.mrf.mxu1 }
 0x44e   : > { %v1724_v22 = vmul.f32 %v1722_v23, %v1126_v14  ;;  %v1712_v25 = vsub.f32 %v1701_v17, %v2028_v8 }
 0x450   : > { %v1726_v60 = vadd.f32 %v1724_v22, %v1128_v19  ;;  %v1723_v28 = vmul.f32 %v1720_v48, %v1712_v25 }
 0x452   : > { %1728 = vst [vmem:[%s848_s5] sm:$0xff] %v1726_v60  ;;  %v1725_v59 = vmul.f32 %v1723_v28, %v1130_v26 }
 0x454   : > { %v1727_v62 = vadd.f32 %v1725_v59, %v1132_v15 }
 0x456   : > { %1729 = vst [vmem:[%s848_s5 + $0x8] sm:$0xff] %v1727_v62 }
 0x457   : > { %2659 = shalt.err (!%p2656_p5)
}
 0x458   : > { %s2660_s30 = scalar_lea.hbm %s3329_s3, 256  ;;  %s2664_s22 = scalar_lea.hbm %s3453_s6, 1024 }
 0x459   : > { %p2661_p6 = scmp.ne.s32.totalorder %s3329_s3, %s2660_s30  ;;  %p2665_p11 = scmp.lt.s32.totalorder %s3329_s3, %s3453_s6 }
 0x45a   : > { %p2666_p0 = scmp.lt.s32.totalorder %s2664_s22, %s2660_s30 }
 0x45b   : > { %p2662_p10 = pnand %p2661_p6, %p3454_p2 }
 0x45c   : > { %p2667_p13 = por %p2666_p0, %p2665_p11 }
 0x45d   : > { %p2663_p8 = pneg %p2662_p10 }
 0x45f   : > { %p2668_p1 = pnand %p2667_p13, %p2663_p8 }
 0x461   : > { %2671 = shalt.err (!%p2668_p1)
}
 0x462   : > { %s2754_s25 = smov 128   ;;  %s2755_s4 = smov 8  }
 0x463   : > { %2181 = dma.vmem_to_hbm [thread:$0]  (%p3454_p2), %s3331_s27, 256, %s3329_s3, %s3333_s2, %s2754_s25, %s2754_s25, %s2755_s4  }
 0x464 PF: > { %s3455_s23 = sld [smem:[#allocation33_spill]] }
 0x465   : > { %s3456_s26 = sld [smem:[#allocation31_spill]] }
 0x466   : > { %s3457_s0 = sld [smem:[#allocation37_spill]] }
 0x46a   : > { %p2248_p9 = scmp.ge.s32.totalorder %s3455_s23, 2 }
 0x46b   : > { %s1759_s1 = sand.u32 1, %s3456_s26  }
 0x46c   : > { %p3458_p3 = scmp.ne.s32.totalorder %s3457_s0, 0  ;;  %s1760_s30 = scalar_lea.sflag [#allocation4], %s1759_s1 }
 0x46e   : > { %p2221_p12 = pnand %p2248_p9, %p3458_p3 }
 0x470   : > { %p2222_p4 = pneg %p2221_p12 }
 0x472   : > { %2717 = dma.done.wait (%p2222_p4), %s1760_s30, 256  }
 0x473   : > { %2719 = vsyncadd (%p2222_p4), %s1760_s30, 4294967040  ;;  %s3459_s30 = sld [smem:[#allocation34_spill]]  ;;  %s3462_s3 = smov %s2726_s28 }
 0x474   : > { %s3460_s29 = sld [smem:[#allocation32_spill]] }
 0x475   : > { %s3461_s22 = sld [smem:[#allocation35_spill]] }
 0x479   : > { %p39_p7 = scmp.ge.s32.totalorder %s3459_s30, 6  }
 0x47a   : > { %s3463_s28 = smov %s3460_s29 }
 0x47b   : > { %s3464_s29 = smov %s3461_s22  ;;  %41 = sbr.rel (!%p39_p7) target bundleno = 20 (0x14), region = 196 }
 0x480   :  { %1765 = vsyncpa [#allocation3], 1 }
 0x481   :  { %1767 = vsyncpa [#allocation3 + $0x1], 1 }
 0x482   :  { %1768 = vsyncpa [#allocation6], 1 }
 0x483   :  { %1769 = vsyncpa [#allocation9], 1 }
 0x484   :  { %1770 = vsyncpa [#allocation12], 1 }
 0x485   :  { %1771 = vsyncpa [#allocation15], 1 }
 0x486   :  { %1772 = vsyncpa [#allocation18], 1 }
 0x487   :  { %1773 = vsyncpa [#allocation21], 1 }
 0x488   :  { %1774 = vsyncpa [#allocation4], 1 }
 0x489   :  { %1776 = vsyncpa [#allocation4 + $0x1], 1 }

</bundles_post_ra>
